<compile_context>
chip_gen: v7x
topology: tpu7x:2x2x1
jax: 0.10.0
libtpu: 0.0.40
codegen_flags: <defaults>
</compile_context>

<pallas_src>
import functools

import jax
import jax.numpy as jnp
from jax.experimental import pallas as pl
from jax.experimental.pallas import tpu as pltpu

LANE = 128
VMEM_LIMIT = 32 * 1024 * 1024      # sized for v7x's 64 MiB physical VMEM


def _round_up(x, m):
    return ((x + m - 1) // m) * m


def _pick_batch_block(n):
    """Images per grid step: >=2 grid steps when possible (v7x megacore), <=8/step."""
    if n >= 16:
        return 8
    if n >= 2:
        return (n + 1) // 2
    return 1


# ----------------------------- Pallas kernels ------------------------------

def _quant_kernel(x_ref, o_ref, *, inv_scale, scale, zero_point):
    """Simulated quint8 quantize -> dequantize of the raw input (f32 math)."""
    x = x_ref[...]
    q = jnp.clip(jnp.round(x * inv_scale) + zero_point, 0.0, 255.0)
    o_ref[...] = ((q - zero_point) * scale).astype(o_ref.dtype)


def _conv_pool_kernel(a_ref, w_ref, o_ref, *, bb):
    """Per batch block: conv-as-matmul + ReLU + 2x2 avg-pool.

    a_ref: (bb, 4, mp, K) bf16 -- quadrant q holds the im2col patches of conv
           output position (2*ph + q//2, 2*pw + q%2).
    w_ref: (K, Cout) bf16 (resident across grid steps).
    o_ref: (bb, mp, Cout) bf16 -- pooled feature map, position-major rows.
    """
    w = w_ref[...]
    for b in range(bb):                 # static unroll; bb*4 small MXU matmuls
        acc = None
        for q in range(4):
            y = jnp.dot(a_ref[b, q], w, preferred_element_type=jnp.float32)
            y = jnp.maximum(y, 0.0)     # ReLU before the pool (f32 epilogue)
            acc = y if acc is None else acc + y
        o_ref[b] = (0.25 * acc).astype(o_ref.dtype)


def _head_kernel(a_ref, w3_ref, w4_ref, b4_ref, w5_ref, b5_ref, o_ref, *, bb):
    """conv3 (as matmul) + ReLU + 1x1 adaptive avg-pool + fc1 + ReLU + fc2."""
    w3 = w3_ref[...]
    w4 = w4_ref[...]
    b4 = b4_ref[...]
    w5 = w5_ref[...]
    b5 = b5_ref[...]
    for b in range(bb):
        h = jnp.dot(a_ref[b], w3, preferred_element_type=jnp.float32)       # (1, 120)
        h = jnp.maximum(h, 0.0)                      # relu3; 1x1 avgpool == identity
        h = jnp.dot(h.astype(jnp.bfloat16), w4,
                    preferred_element_type=jnp.float32) + b4
        h = jnp.maximum(h, 0.0)                      # fc1 + relu4
        h = jnp.dot(h.astype(jnp.bfloat16), w5,
                    preferred_element_type=jnp.float32) + b5
        o_ref[b] = h                                 # fc2 (+ dequant == identity)


# ---------------------------- Pallas wrappers -------------------------------

def fake_quant(x_nhwc, scale, zero_point, b_blk):
    """(N,H,W,C) f32 -> fake-quantized bf16, same shape."""
    n, h, w, c = x_nhwc.shape
    tot = h * w * c
    rows, cols = (tot // LANE, LANE) if tot % LANE == 0 else (1, tot)
    xr = x_nhwc.reshape(n, rows, cols)
    out = pl.pallas_call(
        functools.partial(_quant_kernel, inv_scale=1.0 / scale, scale=scale,
                          zero_point=zero_point),
        grid=(n // b_blk,),
        in_specs=[pl.BlockSpec((b_blk, rows, cols), lambda i: (i, 0, 0))],
        out_specs=pl.BlockSpec((b_blk, rows, cols), lambda i: (i, 0, 0)),
        out_shape=jax.ShapeDtypeStruct((n, rows, cols), jnp.bfloat16),
        compiler_params=pltpu.CompilerParams(
            dimension_semantics=("parallel",), vmem_limit_bytes=VMEM_LIMIT),
    )(xr)
    return out.reshape(n, h, w, c)


def conv_relu_pool(a, w, b_blk):
    """a: (N, 4, mp, K) bf16, w: (K, Cout) bf16 -> (N, mp, Cout) bf16."""
    n, _, mp, k = a.shape
    cout = w.shape[1]
    flops = 2 * n * 4 * mp * k * cout
    bytes_accessed = a.size * 2 + w.size * 2 + n * mp * cout * 2
    return pl.pallas_call(
        functools.partial(_conv_pool_kernel, bb=b_blk),
        grid=(n // b_blk,),
        in_specs=[
            pl.BlockSpec((b_blk, 4, mp, k), lambda i: (i, 0, 0, 0)),
            pl.BlockSpec((k, cout), lambda i: (0, 0)),   # constant idx -> resident
        ],
        out_specs=pl.BlockSpec((b_blk, mp, cout), lambda i: (i, 0, 0)),
        out_shape=jax.ShapeDtypeStruct((n, mp, cout), jnp.bfloat16),
        compiler_params=pltpu.CompilerParams(
            dimension_semantics=("parallel",), vmem_limit_bytes=VMEM_LIMIT),
        cost_estimate=pl.CostEstimate(flops=flops, transcendentals=0,
                                      bytes_accessed=bytes_accessed),
    )(a, w)


def head(a3, w3, w4, b4, w5, b5, b_blk):
    """a3: (N, 1, K3) bf16 -> logits (N, 1, num_classes) f32."""
    n, _, k3 = a3.shape
    c3, f1, nc = w3.shape[1], w4.shape[1], w5.shape[1]
    flops = 2 * n * (k3 * c3 + c3 * f1 + f1 * nc)
    bytes_accessed = (a3.size * 2 + (w3.size + w4.size + w5.size) * 2
                      + (b4.size + b5.size) * 4 + n * nc * 4)
    return pl.pallas_call(
        functools.partial(_head_kernel, bb=b_blk),
        grid=(n // b_blk,),
        in_specs=[
            pl.BlockSpec((b_blk, 1, k3), lambda i: (i, 0, 0)),
            pl.BlockSpec((k3, c3), lambda i: (0, 0)),
            pl.BlockSpec((c3, f1), lambda i: (0, 0)),
            pl.BlockSpec((1, f1), lambda i: (0, 0)),
            pl.BlockSpec((f1, nc), lambda i: (0, 0)),
            pl.BlockSpec((1, nc), lambda i: (0, 0)),
        ],
        out_specs=pl.BlockSpec((b_blk, 1, nc), lambda i: (i, 0, 0)),
        out_shape=jax.ShapeDtypeStruct((n, 1, nc), jnp.float32),
        compiler_params=pltpu.CompilerParams(
            dimension_semantics=("parallel",), vmem_limit_bytes=VMEM_LIMIT),
        cost_estimate=pl.CostEstimate(flops=flops, transcendentals=0,
                                      bytes_accessed=bytes_accessed),
    )(a3, w3, w4, b4, w5, b5)


# ------------------------------- model glue ---------------------------------
# Pure data rearrangement (runs at trace time under jit); all arithmetic is in
# the Pallas kernels above.

def _im2col_pool(x, k):
    """x: (N,H,W,C) -> (N, 4, ph*pw, k*k*C), pool-quadrant axis separated."""
    n, h, w, c = x.shape
    oh, ow = h - k + 1, w - k + 1
    ph, pw = oh // 2, ow // 2
    patches = [x[:, i:i + oh, j:j + ow, :] for i in range(k) for j in range(k)]
    p = jnp.stack(patches, axis=3)                 # (N, OH, OW, k*k, C)
    p = p[:, :2 * ph, :2 * pw]                     # AvgPool2d floor crop
    p = p.reshape(n, ph, 2, pw, 2, k * k, c)
    p = p.transpose(0, 2, 4, 1, 3, 5, 6)           # (N, di, dj, PH, PW, kk, C)
    return p.reshape(n, 4, ph * pw, k * k * c), (ph, pw)


def _im2col(x, k):
    n, h, w, c = x.shape
    oh, ow = h - k + 1, w - k + 1
    patches = [x[:, i:i + oh, j:j + ow, :] for i in range(k) for j in range(k)]
    p = jnp.stack(patches, axis=3).reshape(n, oh * ow, k * k * c)
    return p, (oh, ow)


def _prep_conv_weight(w_oikk):
    """(Cout, Cin, k, k) -> (k*k*Cin, Cout) bf16, (ki, kj, cin) row ordering."""
    cout, cin, k, _ = w_oikk.shape
    w = jnp.transpose(w_oikk, (2, 3, 1, 0)).reshape(k * k * cin, cout)
    return w.astype(jnp.bfloat16)


def _prep_fc(w_oi, b_o):
    """torch (out, in) weight + (out,) bias -> (in, out) bf16, (1, out) f32."""
    return w_oi.T.astype(jnp.bfloat16), b_o.astype(jnp.float32)[None, :]


def init_params(key, num_classes=1):
    ks = jax.random.split(key, 5)

    def w(k, shape, fan_in):
        return jax.random.normal(k, shape, jnp.float32) / jnp.sqrt(float(fan_in))

    return {
        "conv1_w": w(ks[0], (6, 2, 5, 5), 2 * 25),        # bias=False
        "conv2_w": w(ks[1], (16, 6, 5, 5), 6 * 25),       # bias=False
        "conv3_w": w(ks[2], (120, 16, 5, 5), 16 * 25),    # bias=False
        "fc1_w": w(ks[3], (84, 120), 120),
        "fc1_b": jnp.zeros((84,), jnp.float32),
        "fc2_w": w(ks[4], (num_classes, 84), 84),
        "fc2_b": jnp.zeros((num_classes,), jnp.float32),
    }


def cnn_lenet_q_forward(x_nchw, params, scale=0.05, zero_point=128.0):
    num_classes = params["fc2_w"].shape[0]
    n = x_nchw.shape[0]
    b_blk = _pick_batch_block(n)
    n_pad = _round_up(n, b_blk)

    x = jnp.transpose(x_nchw, (0, 2, 3, 1)).astype(jnp.float32)      # NCHW -> NHWC
    if n_pad != n:
        x = jnp.pad(x, ((0, n_pad - n), (0, 0), (0, 0), (0, 0)))

    # quant (fake-quant on the raw input; bf16 out halves all downstream DMA)
    xq = fake_quant(x, scale, zero_point, b_blk)

    # conv1 -> relu1 -> pool1          (one fused kernel, batch-blocked)
    a1, (ph1, pw1) = _im2col_pool(xq, 5)
    y1 = conv_relu_pool(a1, _prep_conv_weight(params["conv1_w"]), b_blk)
    x1 = y1.reshape(n_pad, ph1, pw1, -1)

    # conv2 -> relu2 -> pool2          (one fused kernel, batch-blocked)
    a2, (ph2, pw2) = _im2col_pool(x1, 5)
    y2 = conv_relu_pool(a2, _prep_conv_weight(params["conv2_w"]), b_blk)
    x2 = y2.reshape(n_pad, ph2, pw2, -1)

    # conv3 -> relu3 -> avgpool(1) -> fc1 -> relu4 -> fc2 -> dequant
    a3, (oh3, ow3) = _im2col(x2, 5)
    # TODO(synk): general AdaptiveAvgPool2d; LeNet geometry (32x32 input) gives 1x1 here.
    assert oh3 == 1 and ow3 == 1, "expected 1x1 spatial after conv3"
    w3 = _prep_conv_weight(params["conv3_w"])
    w4, b4 = _prep_fc(params["fc1_w"], params["fc1_b"])
    w5, b5 = _prep_fc(params["fc2_w"], params["fc2_b"])
    out = head(a3, w3, w4, b4, w5, b5, b_blk)
    return out.reshape(n_pad, num_classes)[:n]


if __name__ == "__main__":
    key = jax.random.PRNGKey(0)
    k_params, k_x = jax.random.split(key)

    params = init_params(k_params, num_classes=1)
    # smallest spatial size the 3x(5x5 conv, no pad) + 2x(2x2 pool) chain allows
    x = jax.random.normal(k_x, (2, 2, 32, 32), jnp.float32)

    fwd = jax.jit(functools.partial(cnn_lenet_q_forward, scale=0.05, zero_point=128.0))
    out = jax.block_until_ready(fwd(x, params))
    assert out.shape == (2, 1), out.shape
    print("KERNEL_OK")
</pallas_src>

<mosaic_0001>
module attributes {stable_mosaic.version = 11 : i64} {
  func.func @_quant_kernel(%arg0: i32, %arg1: memref<1x16x128xf32, #tpu.memory_space<vmem>>, %arg2: memref<1x16x128xbf16, #tpu.memory_space<vmem>>) attributes {dimension_semantics = [#tpu.dimension_semantics<parallel>], iteration_bounds = array<i64: 2>, scalar_prefetch = 0 : i64, scratch_operands = 0 : i64, tpu.core_type = #tpu.core_type<tc>, window_params = [{transform_indices = @transform_0, window_bounds = array<i64: 1, 16, 128>}, {transform_indices = @transform_1, window_bounds = array<i64: 1, 16, 128>}]} {
    %c0 = arith.constant 0 : index
    %c0_0 = arith.constant 0 : index
    %c0_1 = arith.constant 0 : index
    %0 = vector.load %arg1[%c0, %c0_0, %c0_1] : memref<1x16x128xf32, #tpu.memory_space<vmem>>, vector<1x16x128xf32>
    %cst = arith.constant 2.000000e+01 : f32
    %1 = vector.broadcast %cst : f32 to vector<1x16x128xf32>
    %2 = arith.mulf %0, %1 : vector<1x16x128xf32>
    %3 = math.roundeven %2 : vector<1x16x128xf32>
    %cst_2 = arith.constant 1.280000e+02 : f32
    %4 = vector.broadcast %cst_2 : f32 to vector<1x16x128xf32>
    %5 = arith.addf %3, %4 : vector<1x16x128xf32>
    %cst_3 = arith.constant 0.000000e+00 : f32
    %cst_4 = arith.constant 2.550000e+02 : f32
    %6 = vector.broadcast %cst_3 : f32 to vector<1x16x128xf32>
    %7 = arith.maximumf %6, %5 : vector<1x16x128xf32>
    %8 = vector.broadcast %cst_4 : f32 to vector<1x16x128xf32>
    %9 = arith.minimumf %8, %7 : vector<1x16x128xf32>
    %cst_5 = arith.constant 1.280000e+02 : f32
    %10 = vector.broadcast %cst_5 : f32 to vector<1x16x128xf32>
    %11 = arith.subf %9, %10 : vector<1x16x128xf32>
    %cst_6 = arith.constant 5.000000e-02 : f32
    %12 = vector.broadcast %cst_6 : f32 to vector<1x16x128xf32>
    %13 = arith.mulf %11, %12 : vector<1x16x128xf32>
    %14 = arith.truncf %13 : vector<1x16x128xf32> to vector<1x16x128xbf16>
    %c0_7 = arith.constant 0 : index
    %c0_8 = arith.constant 0 : index
    %c0_9 = arith.constant 0 : index
    %15 = vector.load %arg2[%c0_7, %c0_8, %c0_9] : memref<1x16x128xbf16, #tpu.memory_space<vmem>>, vector<1x16x128xbf16>
    tpu.vector_store %arg2[%c0_7, %c0_8, %c0_9], %14 {strides = array<i32>} : memref<1x16x128xbf16, #tpu.memory_space<vmem>>, vector<1x16x128xbf16>,
    return
  }
  func.func @transform_0(%arg0: i32) -> (i32, i32, i32) {
    %c0_i32 = arith.constant 0 : i32
    %c0_i32_0 = arith.constant 0 : i32
    %c0_i32_1 = arith.constant 0 : i32
    return %arg0, %c0_i32, %c0_i32_0 : i32, i32, i32
  }
  func.func @transform_1(%arg0: i32) -> (i32, i32, i32) {
    %c0_i32 = arith.constant 0 : i32
    %c0_i32_0 = arith.constant 0 : i32
    %c0_i32_1 = arith.constant 0 : i32
    return %arg0, %c0_i32, %c0_i32_0 : i32, i32, i32
  }
}

module attributes {stable_mosaic.version = 11 : i64} {
  func.func @_conv_pool_kernel(%arg0: i32, %arg1: memref<1x4x196x50xbf16, #tpu.memory_space<vmem>>, %arg2: memref<50x6xbf16, #tpu.memory_space<vmem>>, %arg3: memref<1x196x6xbf16, #tpu.memory_space<vmem>>) attributes {dimension_semantics = [#tpu.dimension_semantics<parallel>], iteration_bounds = array<i64: 2>, scalar_prefetch = 0 : i64, scratch_operands = 0 : i64, tpu.core_type = #tpu.core_type<tc>, window_params = [{transform_indices = @transform_0, window_bounds = array<i64: 1, 4, 196, 50>}, {pipeline_mode = #tpu.pipeline_mode<synchronous>, transform_indices = @transform_1, window_bounds = array<i64: 50, 6>}, {transform_indices = @transform_2, window_bounds = array<i64: 1, 196, 6>}]} {
    %c0 = arith.constant 0 : index
    %c0_0 = arith.constant 0 : index
    %0 = vector.load %arg2[%c0, %c0_0] : memref<50x6xbf16, #tpu.memory_space<vmem>>, vector<50x6xbf16>
    %c0_1 = arith.constant 0 : index
    %c0_2 = arith.constant 0 : index
    %c0_3 = arith.constant 0 : index
    %c0_4 = arith.constant 0 : index
    %1 = vector.load %arg1[%c0_1, %c0_2, %c0_3, %c0_4] : memref<1x4x196x50xbf16, #tpu.memory_space<vmem>>, vector<1x1x196x50xbf16>
    %2 = vector.shape_cast %1 : vector<1x1x196x50xbf16> to vector<196x50xbf16>
    %cst = arith.constant dense<0.000000e+00> : vector<196x6xf32>
    %3 = tpu.matmul %2, %0, %cst {dimension_numbers = #tpu.dot_dimension_numbers<[1], [0], [0], [1], [0, 0, 1, 1], [], []>} : vector<196x50xbf16>, vector<50x6xbf16>, vector<196x6xf32> -> vector<196x6xf32>
    %cst_5 = arith.constant 0.000000e+00 : f32
    %4 = vector.broadcast %cst_5 : f32 to vector<196x6xf32>
    %5 = arith.maximumf %3, %4 : vector<196x6xf32>
    %c0_6 = arith.constant 0 : index
    %c1 = arith.constant 1 : index
    %c0_7 = arith.constant 0 : index
    %c0_8 = arith.constant 0 : index
    %6 = vector.load %arg1[%c0_6, %c1, %c0_7, %c0_8] : memref<1x4x196x50xbf16, #tpu.memory_space<vmem>>, vector<1x1x196x50xbf16>
    %7 = vector.shape_cast %6 : vector<1x1x196x50xbf16> to vector<196x50xbf16>
    %cst_9 = arith.constant dense<0.000000e+00> : vector<196x6xf32>
    %8 = tpu.matmul %7, %0, %cst_9 {dimension_numbers = #tpu.dot_dimension_numbers<[1], [0], [0], [1], [0, 0, 1, 1], [], []>} : vector<196x50xbf16>, vector<50x6xbf16>, vector<196x6xf32> -> vector<196x6xf32>
    %cst_10 = arith.constant 0.000000e+00 : f32
    %9 = vector.broadcast %cst_10 : f32 to vector<196x6xf32>
    %10 = arith.maximumf %8, %9 : vector<196x6xf32>
    %11 = arith.addf %5, %10 : vector<196x6xf32>
    %c0_11 = arith.constant 0 : index
    %c2 = arith.constant 2 : index
    %c0_12 = arith.constant 0 : index
    %c0_13 = arith.constant 0 : index
    %12 = vector.load %arg1[%c0_11, %c2, %c0_12, %c0_13] : memref<1x4x196x50xbf16, #tpu.memory_space<vmem>>, vector<1x1x196x50xbf16>
    %13 = vector.shape_cast %12 : vector<1x1x196x50xbf16> to vector<196x50xbf16>
    %cst_14 = arith.constant dense<0.000000e+00> : vector<196x6xf32>
    %14 = tpu.matmul %13, %0, %cst_14 {dimension_numbers = #tpu.dot_dimension_numbers<[1], [0], [0], [1], [0, 0, 1, 1], [], []>} : vector<196x50xbf16>, vector<50x6xbf16>, vector<196x6xf32> -> vector<196x6xf32>
    %cst_15 = arith.constant 0.000000e+00 : f32
    %15 = vector.broadcast %cst_15 : f32 to vector<196x6xf32>
    %16 = arith.maximumf %14, %15 : vector<196x6xf32>
    %17 = arith.addf %11, %16 : vector<196x6xf32>
    %c0_16 = arith.constant 0 : index
    %c3 = arith.constant 3 : index
    %c0_17 = arith.constant 0 : index
    %c0_18 = arith.constant 0 : index
    %18 = vector.load %arg1[%c0_16, %c3, %c0_17, %c0_18] : memref<1x4x196x50xbf16, #tpu.memory_space<vmem>>, vector<1x1x196x50xbf16>
    %19 = vector.shape_cast %18 : vector<1x1x196x50xbf16> to vector<196x50xbf16>
    %cst_19 = arith.constant dense<0.000000e+00> : vector<196x6xf32>
    %20 = tpu.matmul %19, %0, %cst_19 {dimension_numbers = #tpu.dot_dimension_numbers<[1], [0], [0], [1], [0, 0, 1, 1], [], []>} : vector<196x50xbf16>, vector<50x6xbf16>, vector<196x6xf32> -> vector<196x6xf32>
    %cst_20 = arith.constant 0.000000e+00 : f32
    %21 = vector.broadcast %cst_20 : f32 to vector<196x6xf32>
    %22 = arith.maximumf %20, %21 : vector<196x6xf32>
    %23 = arith.addf %17, %22 : vector<196x6xf32>
    %cst_21 = arith.constant 2.500000e-01 : f32
    %24 = vector.broadcast %cst_21 : f32 to vector<196x6xf32>
    %25 = arith.mulf %24, %23 : vector<196x6xf32>
    %26 = arith.truncf %25 : vector<196x6xf32> to vector<196x6xbf16>
    %c0_22 = arith.constant 0 : index
    %c0_23 = arith.constant 0 : index
    %c0_24 = arith.constant 0 : index
    %27 = vector.load %arg3[%c0_22, %c0_23, %c0_24] : memref<1x196x6xbf16, #tpu.memory_space<vmem>>, vector<1x196x6xbf16>
    %28 = vector.shape_cast %27 : vector<1x196x6xbf16> to vector<196x6xbf16>
    %29 = vector.shape_cast %26 : vector<196x6xbf16> to vector<1x196x6xbf16>
    tpu.vector_store %arg3[%c0_22, %c0_23, %c0_24], %29 {strides = array<i32>} : memref<1x196x6xbf16, #tpu.memory_space<vmem>>, vector<1x196x6xbf16>,
    return
  }
  func.func @transform_0(%arg0: i32) -> (i32, i32, i32, i32) {
    %c0_i32 = arith.constant 0 : i32
    %c0_i32_0 = arith.constant 0 : i32
    %c0_i32_1 = arith.constant 0 : i32
    %c0_i32_2 = arith.constant 0 : i32
    return %arg0, %c0_i32, %c0_i32_0, %c0_i32_1 : i32, i32, i32, i32
  }
  func.func @transform_1(%arg0: i32) -> (i32, i32) {
    %c0_i32 = arith.constant 0 : i32
    %c0_i32_0 = arith.constant 0 : i32
    %c0_i32_1 = arith.constant 0 : i32
    return %c0_i32, %c0_i32_0 : i32, i32
  }
  func.func @transform_2(%arg0: i32) -> (i32, i32, i32) {
    %c0_i32 = arith.constant 0 : i32
    %c0_i32_0 = arith.constant 0 : i32
    %c0_i32_1 = arith.constant 0 : i32
    return %arg0, %c0_i32, %c0_i32_0 : i32, i32, i32
  }
}

module attributes {stable_mosaic.version = 11 : i64} {
  func.func @_conv_pool_kernel(%arg0: i32, %arg1: memref<1x4x25x150xbf16, #tpu.memory_space<vmem>>, %arg2: memref<150x16xbf16, #tpu.memory_space<vmem>>, %arg3: memref<1x25x16xbf16, #tpu.memory_space<vmem>>) attributes {dimension_semantics = [#tpu.dimension_semantics<parallel>], iteration_bounds = array<i64: 2>, scalar_prefetch = 0 : i64, scratch_operands = 0 : i64, tpu.core_type = #tpu.core_type<tc>, window_params = [{transform_indices = @transform_0, window_bounds = array<i64: 1, 4, 25, 150>}, {pipeline_mode = #tpu.pipeline_mode<synchronous>, transform_indices = @transform_1, window_bounds = array<i64: 150, 16>}, {transform_indices = @transform_2, window_bounds = array<i64: 1, 25, 16>}]} {
    %c0 = arith.constant 0 : index
    %c0_0 = arith.constant 0 : index
    %0 = vector.load %arg2[%c0, %c0_0] : memref<150x16xbf16, #tpu.memory_space<vmem>>, vector<150x16xbf16>
    %c0_1 = arith.constant 0 : index
    %c0_2 = arith.constant 0 : index
    %c0_3 = arith.constant 0 : index
    %c0_4 = arith.constant 0 : index
    %1 = vector.load %arg1[%c0_1, %c0_2, %c0_3, %c0_4] : memref<1x4x25x150xbf16, #tpu.memory_space<vmem>>, vector<1x1x25x150xbf16>
    %2 = vector.shape_cast %1 : vector<1x1x25x150xbf16> to vector<25x150xbf16>
    %cst = arith.constant dense<0.000000e+00> : vector<25x16xf32>
    %3 = tpu.matmul %2, %0, %cst {dimension_numbers = #tpu.dot_dimension_numbers<[1], [0], [0], [1], [0, 0, 1, 1], [], []>} : vector<25x150xbf16>, vector<150x16xbf16>, vector<25x16xf32> -> vector<25x16xf32>
    %cst_5 = arith.constant 0.000000e+00 : f32
    %4 = vector.broadcast %cst_5 : f32 to vector<25x16xf32>
    %5 = arith.maximumf %3, %4 : vector<25x16xf32>
    %c0_6 = arith.constant 0 : index
    %c1 = arith.constant 1 : index
    %c0_7 = arith.constant 0 : index
    %c0_8 = arith.constant 0 : index
    %6 = vector.load %arg1[%c0_6, %c1, %c0_7, %c0_8] : memref<1x4x25x150xbf16, #tpu.memory_space<vmem>>, vector<1x1x25x150xbf16>
    %7 = vector.shape_cast %6 : vector<1x1x25x150xbf16> to vector<25x150xbf16>
    %cst_9 = arith.constant dense<0.000000e+00> : vector<25x16xf32>
    %8 = tpu.matmul %7, %0, %cst_9 {dimension_numbers = #tpu.dot_dimension_numbers<[1], [0], [0], [1], [0, 0, 1, 1], [], []>} : vector<25x150xbf16>, vector<150x16xbf16>, vector<25x16xf32> -> vector<25x16xf32>
    %cst_10 = arith.constant 0.000000e+00 : f32
    %9 = vector.broadcast %cst_10 : f32 to vector<25x16xf32>
    %10 = arith.maximumf %8, %9 : vector<25x16xf32>
    %11 = arith.addf %5, %10 : vector<25x16xf32>
    %c0_11 = arith.constant 0 : index
    %c2 = arith.constant 2 : index
    %c0_12 = arith.constant 0 : index
    %c0_13 = arith.constant 0 : index
    %12 = vector.load %arg1[%c0_11, %c2, %c0_12, %c0_13] : memref<1x4x25x150xbf16, #tpu.memory_space<vmem>>, vector<1x1x25x150xbf16>
    %13 = vector.shape_cast %12 : vector<1x1x25x150xbf16> to vector<25x150xbf16>
    %cst_14 = arith.constant dense<0.000000e+00> : vector<25x16xf32>
    %14 = tpu.matmul %13, %0, %cst_14 {dimension_numbers = #tpu.dot_dimension_numbers<[1], [0], [0], [1], [0, 0, 1, 1], [], []>} : vector<25x150xbf16>, vector<150x16xbf16>, vector<25x16xf32> -> vector<25x16xf32>
    %cst_15 = arith.constant 0.000000e+00 : f32
    %15 = vector.broadcast %cst_15 : f32 to vector<25x16xf32>
    %16 = arith.maximumf %14, %15 : vector<25x16xf32>
    %17 = arith.addf %11, %16 : vector<25x16xf32>
    %c0_16 = arith.constant 0 : index
    %c3 = arith.constant 3 : index
    %c0_17 = arith.constant 0 : index
    %c0_18 = arith.constant 0 : index
    %18 = vector.load %arg1[%c0_16, %c3, %c0_17, %c0_18] : memref<1x4x25x150xbf16, #tpu.memory_space<vmem>>, vector<1x1x25x150xbf16>
    %19 = vector.shape_cast %18 : vector<1x1x25x150xbf16> to vector<25x150xbf16>
    %cst_19 = arith.constant dense<0.000000e+00> : vector<25x16xf32>
    %20 = tpu.matmul %19, %0, %cst_19 {dimension_numbers = #tpu.dot_dimension_numbers<[1], [0], [0], [1], [0, 0, 1, 1], [], []>} : vector<25x150xbf16>, vector<150x16xbf16>, vector<25x16xf32> -> vector<25x16xf32>
    %cst_20 = arith.constant 0.000000e+00 : f32
    %21 = vector.broadcast %cst_20 : f32 to vector<25x16xf32>
    %22 = arith.maximumf %20, %21 : vector<25x16xf32>
    %23 = arith.addf %17, %22 : vector<25x16xf32>
    %cst_21 = arith.constant 2.500000e-01 : f32
    %24 = vector.broadcast %cst_21 : f32 to vector<25x16xf32>
    %25 = arith.mulf %24, %23 : vector<25x16xf32>
    %26 = arith.truncf %25 : vector<25x16xf32> to vector<25x16xbf16>
    %c0_22 = arith.constant 0 : index
    %c0_23 = arith.constant 0 : index
    %c0_24 = arith.constant 0 : index
    %27 = vector.load %arg3[%c0_22, %c0_23, %c0_24] : memref<1x25x16xbf16, #tpu.memory_space<vmem>>, vector<1x25x16xbf16>
    %28 = vector.shape_cast %27 : vector<1x25x16xbf16> to vector<25x16xbf16>
    %29 = vector.shape_cast %26 : vector<25x16xbf16> to vector<1x25x16xbf16>
    tpu.vector_store %arg3[%c0_22, %c0_23, %c0_24], %29 {strides = array<i32>} : memref<1x25x16xbf16, #tpu.memory_space<vmem>>, vector<1x25x16xbf16>,
    return
  }
  func.func @transform_0(%arg0: i32) -> (i32, i32, i32, i32) {
    %c0_i32 = arith.constant 0 : i32
    %c0_i32_0 = arith.constant 0 : i32
    %c0_i32_1 = arith.constant 0 : i32
    %c0_i32_2 = arith.constant 0 : i32
    return %arg0, %c0_i32, %c0_i32_0, %c0_i32_1 : i32, i32, i32, i32
  }
  func.func @transform_1(%arg0: i32) -> (i32, i32) {
    %c0_i32 = arith.constant 0 : i32
    %c0_i32_0 = arith.constant 0 : i32
    %c0_i32_1 = arith.constant 0 : i32
    return %c0_i32, %c0_i32_0 : i32, i32
  }
  func.func @transform_2(%arg0: i32) -> (i32, i32, i32) {
    %c0_i32 = arith.constant 0 : i32
    %c0_i32_0 = arith.constant 0 : i32
    %c0_i32_1 = arith.constant 0 : i32
    return %arg0, %c0_i32, %c0_i32_0 : i32, i32, i32
  }
}

module attributes {stable_mosaic.version = 11 : i64} {
  func.func @_head_kernel(%arg0: i32, %arg1: memref<1x1x400xbf16, #tpu.memory_space<vmem>>, %arg2: memref<400x120xbf16, #tpu.memory_space<vmem>>, %arg3: memref<120x84xbf16, #tpu.memory_space<vmem>>, %arg4: memref<1x84xf32, #tpu.memory_space<vmem>>, %arg5: memref<84x1xbf16, #tpu.memory_space<vmem>>, %arg6: memref<1x1xf32, #tpu.memory_space<vmem>>, %arg7: memref<1x1x1xf32, #tpu.memory_space<vmem>>) attributes {dimension_semantics = [#tpu.dimension_semantics<parallel>], iteration_bounds = array<i64: 2>, scalar_prefetch = 0 : i64, scratch_operands = 0 : i64, tpu.core_type = #tpu.core_type<tc>, window_params = [{transform_indices = @transform_0, window_bounds = array<i64: 1, 1, 400>}, {pipeline_mode = #tpu.pipeline_mode<synchronous>, transform_indices = @transform_1, window_bounds = array<i64: 400, 120>}, {pipeline_mode = #tpu.pipeline_mode<synchronous>, transform_indices = @transform_2, window_bounds = array<i64: 120, 84>}, {pipeline_mode = #tpu.pipeline_mode<synchronous>, transform_indices = @transform_3, window_bounds = array<i64: 1, 84>}, {pipeline_mode = #tpu.pipeline_mode<synchronous>, transform_indices = @transform_4, window_bounds = array<i64: 84, 1>}, {pipeline_mode = #tpu.pipeline_mode<synchronous>, transform_indices = @transform_5, window_bounds = array<i64: 1, 1>}, {transform_indices = @transform_6, window_bounds = array<i64: 1, 1, 1>}]} {
    %c0 = arith.constant 0 : index
    %c0_0 = arith.constant 0 : index
    %0 = vector.load %arg2[%c0, %c0_0] : memref<400x120xbf16, #tpu.memory_space<vmem>>, vector<400x120xbf16>
    %c0_1 = arith.constant 0 : index
    %c0_2 = arith.constant 0 : index
    %1 = vector.load %arg3[%c0_1, %c0_2] : memref<120x84xbf16, #tpu.memory_space<vmem>>, vector<120x84xbf16>
    %c0_3 = arith.constant 0 : index
    %c0_4 = arith.constant 0 : index
    %2 = vector.load %arg4[%c0_3, %c0_4] : memref<1x84xf32, #tpu.memory_space<vmem>>, vector<1x84xf32>
    %c0_5 = arith.constant 0 : index
    %c0_6 = arith.constant 0 : index
    %3 = vector.load %arg5[%c0_5, %c0_6] : memref<84x1xbf16, #tpu.memory_space<vmem>>, vector<84x1xbf16>
    %c0_7 = arith.constant 0 : index
    %c0_8 = arith.constant 0 : index
    %4 = vector.load %arg6[%c0_7, %c0_8] : memref<1x1xf32, #tpu.memory_space<vmem>>, vector<1x1xf32>
    %c0_9 = arith.constant 0 : index
    %c0_10 = arith.constant 0 : index
    %c0_11 = arith.constant 0 : index
    %5 = vector.load %arg1[%c0_9, %c0_10, %c0_11] : memref<1x1x400xbf16, #tpu.memory_space<vmem>>, vector<1x1x400xbf16>
    %6 = vector.shape_cast %5 : vector<1x1x400xbf16> to vector<1x400xbf16>
    %cst = arith.constant dense<0.000000e+00> : vector<1x120xf32>
    %7 = tpu.matmul %6, %0, %cst {dimension_numbers = #tpu.dot_dimension_numbers<[1], [0], [0], [1], [0, 0, 1, 1], [], []>} : vector<1x400xbf16>, vector<400x120xbf16>, vector<1x120xf32> -> vector<1x120xf32>
    %cst_12 = arith.constant 0.000000e+00 : f32
    %8 = vector.broadcast %cst_12 : f32 to vector<1x120xf32>
    %9 = arith.maximumf %7, %8 : vector<1x120xf32>
    %10 = arith.truncf %9 : vector<1x120xf32> to vector<1x120xbf16>
    %cst_13 = arith.constant dense<0.000000e+00> : vector<1x84xf32>
    %11 = tpu.matmul %10, %1, %cst_13 {dimension_numbers = #tpu.dot_dimension_numbers<[1], [0], [0], [1], [0, 0, 1, 1], [], []>} : vector<1x120xbf16>, vector<120x84xbf16>, vector<1x84xf32> -> vector<1x84xf32>
    %12 = arith.addf %11, %2 : vector<1x84xf32>
    %cst_14 = arith.constant 0.000000e+00 : f32
    %13 = vector.broadcast %cst_14 : f32 to vector<1x84xf32>
    %14 = arith.maximumf %12, %13 : vector<1x84xf32>
    %15 = arith.truncf %14 : vector<1x84xf32> to vector<1x84xbf16>
    %cst_15 = arith.constant dense<0.000000e+00> : vector<1x1xf32>
    %16 = tpu.matmul %15, %3, %cst_15 {dimension_numbers = #tpu.dot_dimension_numbers<[1], [0], [0], [1], [0, 0, 1, 1], [], []>} : vector<1x84xbf16>, vector<84x1xbf16>, vector<1x1xf32> -> vector<1x1xf32>
    %17 = arith.addf %16, %4 : vector<1x1xf32>
    %c0_16 = arith.constant 0 : index
    %c0_17 = arith.constant 0 : index
    %c0_18 = arith.constant 0 : index
    %18 = vector.load %arg7[%c0_16, %c0_17, %c0_18] : memref<1x1x1xf32, #tpu.memory_space<vmem>>, vector<1x1x1xf32>
    %19 = vector.shape_cast %18 : vector<1x1x1xf32> to vector<1x1xf32>
    %20 = vector.shape_cast %17 : vector<1x1xf32> to vector<1x1x1xf32>
    tpu.vector_store %arg7[%c0_16, %c0_17, %c0_18], %20 {strides = array<i32>} : memref<1x1x1xf32, #tpu.memory_space<vmem>>, vector<1x1x1xf32>,
    return
  }
  func.func @transform_0(%arg0: i32) -> (i32, i32, i32) {
    %c0_i32 = arith.constant 0 : i32
    %c0_i32_0 = arith.constant 0 : i32
    %c0_i32_1 = arith.constant 0 : i32
    return %arg0, %c0_i32, %c0_i32_0 : i32, i32, i32
  }
  func.func @transform_1(%arg0: i32) -> (i32, i32) {
    %c0_i32 = arith.constant 0 : i32
    %c0_i32_0 = arith.constant 0 : i32
    %c0_i32_1 = arith.constant 0 : i32
    return %c0_i32, %c0_i32_0 : i32, i32
  }
  func.func @transform_2(%arg0: i32) -> (i32, i32) {
    %c0_i32 = arith.constant 0 : i32
    %c0_i32_0 = arith.constant 0 : i32
    %c0_i32_1 = arith.constant 0 : i32
    return %c0_i32, %c0_i32_0 : i32, i32
  }
  func.func @transform_3(%arg0: i32) -> (i32, i32) {
    %c0_i32 = arith.constant 0 : i32
    %c0_i32_0 = arith.constant 0 : i32
    %c0_i32_1 = arith.constant 0 : i32
    return %c0_i32, %c0_i32_0 : i32, i32
  }
  func.func @transform_4(%arg0: i32) -> (i32, i32) {
    %c0_i32 = arith.constant 0 : i32
    %c0_i32_0 = arith.constant 0 : i32
    %c0_i32_1 = arith.constant 0 : i32
    return %c0_i32, %c0_i32_0 : i32, i32
  }
  func.func @transform_5(%arg0: i32) -> (i32, i32) {
    %c0_i32 = arith.constant 0 : i32
    %c0_i32_0 = arith.constant 0 : i32
    %c0_i32_1 = arith.constant 0 : i32
    return %c0_i32, %c0_i32_0 : i32, i32
  }
  func.func @transform_6(%arg0: i32) -> (i32, i32, i32) {
    %c0_i32 = arith.constant 0 : i32
    %c0_i32_0 = arith.constant 0 : i32
    %c0_i32_1 = arith.constant 0 : i32
    return %arg0, %c0_i32, %c0_i32_0 : i32, i32, i32
  }
}

</mosaic_0001>

<bundles_post_ra>
// kernel: cnn_lenet_q_forward.4
= control target key start
LH: loop header
LB: loop body
LE: loop exit
PB: predicated region body
PF: predicated region fallthrough
CT: control target
= control target key end

     0   :  { %s250_s6 = smov 0   ;;  %s267_s0 = inlined_call_operand.vmem [shape: f32[2,16,128], index: 0, kind: input, shape index: {}]   ;;  %s268_s1 = inlined_call_operand.vmem [shape: bf16[2,16,128], index: 1, kind: output, shape index: {}]  }
   0x1 LB: > { %s198_s7 = sadd.s32 4294967295, %s238_s6   ;;  %p202_p0 = scmp.ge.s32.totalorder %s238_s6, 1  ;;  %s238_s6 = sphi %s250_s6, %s11_s6  }
   0x2   : > { %p87_p1 = scmp.lt.s32.totalorder %s238_s6, 3 }
   0x4   : > { %p88_p2 = pnand %p202_p0, %p87_p1 }
   0x5   : > { %p107_p3 = scmp.lt.s32.totalorder (!%p88_p2), %s198_s7, 1 }
   0x6   : > { %91 = sbr.rel (%p88_p2) target bundleno = 34 (0x22), region = 24 }
   0xd   : > { %s270_s7 = smov (!%p107_p3, %s198_s7), 1 }
   0xe   : > { %s213_s8 = sshll.u32 %s270_s7, 4  ;;  %s214_s12 = sshll.u32 %s270_s7, 3 }
   0xf   : > { %s111_s11 = scalar_lea.vmem %s267_s0, %s213_s8  ;;  %s116_s15 = scalar_lea.vmem %s268_s1, %s214_s12 }
  0x10   : > { %v117_v0 = vld [vmem:[%s111_s11] sm:$0xff]  ;;  %v118_v1 = vld [vmem:[%s111_s11 + $0x8] sm:$0xff] }
  0x11   : > { %v119_v2 = vmul.f32 20.0, %v117_v0  ;;  %v120_v3 = vmul.f32 20.0, %v118_v1 }
  0x13   : > { %v222_v4 = vround.rtne.f32 %v119_v2  ;;  %v223_v5 = vround.rtne.f32 %v120_v3 }
  0x15   : > { %v123_v6 = vadd.f32 128.0, %v222_v4  ;;  %v124_v7 = vadd.f32 128.0, %v223_v5 }
  0x17   : > { %v125_v8 = vmax.f32 %v123_v6, 0.0  ;;  %v126_v9 = vmax.f32 %v124_v7, 0.0 }
  0x19   : > { %v127_v10 = vmin.f32 %v125_v8, 255.0  ;;  %v128_v11 = vmin.f32 %v126_v9, 255.0 }
  0x1b   : > { %v207_v12 = vadd.f32 -128.0, %v127_v10  ;;  %v208_v13 = vadd.f32 -128.0, %v128_v11 }
  0x1d   : > { %v131_v14 = vmul.f32 0.05, %v207_v12  ;;  %v132_v15 = vmul.f32 0.05, %v208_v13 }
  0x1f   : > { %v220_v16 = vpack.c.bf16 %v132_v15, %v131_v14 }
  0x21   : > { %221 = vst [vmem:[%s116_s15] sm:$0xff] %v220_v16  }
  0x22 PF: > { %s11_s6 = sadd.s32 1, %s238_s6  }
  0x23   : > { %p8_p4 = scmp.ge.s32.totalorder %s11_s6, 4  }
  0x25   :  { %10 = sbr.rel (!%p8_p4) target bundleno = 1 (0x1), region = 54 }

// kernel: cnn_lenet_q_forward.5
= control target key start
LH: loop header
LB: loop body
LE: loop exit
PB: predicated region body
PF: predicated region fallthrough
CT: control target
= control target key end

     0   :  { %s2259_s9 = smov 0   ;;  %s2644_s0 = inlined_call_operand.vmem [shape: bf16[2,4,196,50], index: 0, kind: input, shape index: {}]   ;;  %s2645_s1 = inlined_call_operand.vmem [shape: bf16[50,6], index: 1, kind: input, shape index: {}]   ;;  %s2646_s2 = inlined_call_operand.vmem [shape: bf16[2,196,6], index: 2, kind: output, shape index: {}]  }
   0x1 LB: > { %s1616_s10 = sadd.s32 4294967295, %s2240_s9   ;;  %p1620_p0 = scmp.ge.s32.totalorder %s2240_s9, 1  ;;  %s2240_s9 = sphi %s2259_s9, %s12_s9  }
   0x2   : > { %p112_p1 = scmp.lt.s32.totalorder %s2240_s9, 3 }
   0x4   : > { %p113_p2 = pnand %p1620_p0, %p112_p1 }
   0x5   : > { %v2178_v0 = vld [vmem:[%s2645_s1] sm:$0xff] (!%p113_p2)   ;;  %v2242_v1 = vmov (!%p113_p2), 0.0   ;;  %v2179_v2 = vld [vmem:[%s2645_s1 + $0x8] sm:$0xff] (!%p113_p2)   ;;  %p134_p3 = scmp.lt.s32.totalorder (!%p113_p2), %s1616_s10, 1  ;;  %vm2243_vm0 = vmmov (!%p113_p2), 0   ;;  %v2180_v3 = vld [vmem:[%s2645_s1 + $0x10] sm:$0xff] (!%p113_p2)  }
   0x6   : > { %116 = sbr.rel (%p113_p2) target bundleno = 445 (0x1bd), region = 28  ;;  %1926 = vmatprep.subr.bf16.mxu0 (!%p113_p2), %v2242_v1  ;;  %1986 = vmatprep.subr.bf16.mxu1 (!%p113_p2), %v2242_v1  ;;  %v2181_v4 = vld [vmem:[%s2645_s1 + $0x18] ss:$0 sps:$4 sm:$0x11] (!%p113_p2)   ;;  %vm301_vm1 = vcmask (!%p113_p2), 1040384   ;;  %vm261_vm2 = vcmask (!%p113_p2), 408576  }
   0x7   : > { %1927 = vmatpush3.bf16.msra.mxu0 (!%p113_p2), %v2178_v0  ;;  %1987 = vmatpush3.bf16.msra.mxu1 (!%p113_p2), %v2178_v0  ;;  %v303_v5 = vsel (!%p113_p2), %vm301_vm1, %v2181_v4, 0  ;;  %vm1534_vm3 = vcmask (!%p113_p2), 44032   ;;  %vm1559_vm4 = vcmask (!%p113_p2), 41984  }
   0x8   : > { %1928 = vmatprep.subr.bf16.mxu0 (!%p113_p2), %v2242_v1  ;;  %1988 = vmatprep.subr.bf16.mxu1 (!%p113_p2), %v2242_v1 }
   0x9   : > { %1934 = vmatprep.mubr.msk.bf16.mxu0 (!%p113_p2), %vm2243_vm0, %v2242_v1  ;;  %1994 = vmatprep.mubr.msk.bf16.mxu1 (!%p113_p2), %vm2243_vm0, %v2242_v1 }
   0xb   : > { %1929 = vmatpush3.bf16.msra.mxu0 (!%p113_p2), %v2179_v2  ;;  %1989 = vmatpush3.bf16.msra.mxu1 (!%p113_p2), %v2179_v2 }
   0xc   : > { %1930 = vmatprep.subr.bf16.mxu0 (!%p113_p2), %v2242_v1  ;;  %1990 = vmatprep.subr.bf16.mxu1 (!%p113_p2), %v2242_v1 }
   0xd   : > { %s2648_s10 = smov (!%p134_p3, %s1616_s10), 1 }
   0xe   : > { %s2166_s19 = smul.u32 400, %s2648_s10 }
   0xf   : > { %1931 = vmatpush3.bf16.msra.mxu0 %v2180_v3  ;;  %1991 = vmatpush3.bf16.msra.mxu1 %v2180_v3  ;;  %s2167_s23 = smul.u32 100, %s2648_s10 }
  0x10   : > { %s2295_s22 = scalar_lea.vmem %s2644_s0, %s2166_s19  ;;  %1932 = vmatprep.subr.bf16.mxu0 %v2242_v1  ;;  %1992 = vmatprep.subr.bf16.mxu1 %v2242_v1 }
  0x11   : > { %v2182_v6 = vld [vmem:[%s2295_s22] sm:$0xff]   ;;  %v2184_v8 = vld [vmem:[%s2295_s22 + $0x8] sm:$0xff]   ;;  %v2186_v10 = vld [vmem:[%s2295_s22 + $0x10] sm:$0xff]   ;;  %s2567_s26 = scalar_lea.vmem %s2646_s2, %s2167_s23 }
  0x12   : > { %v2183_v7 = vld [vmem:[%s2295_s22 + $0x64] sm:$0xff]   ;;  %v2185_v9 = vld [vmem:[%s2295_s22 + $0x6c] sm:$0xff]   ;;  %v2187_v11 = vld [vmem:[%s2295_s22 + $0x74] sm:$0xff]  }
  0x13   : > { %1933 = vmatpush3.bf16.msra.mxu0 %v303_v5  ;;  %1993 = vmatpush3.bf16.msra.mxu1 %v303_v5  ;;  %v2188_v12 = vld [vmem:[%s2295_s22 + $0x18] sm:$0xff]   ;;  %v2190_v14 = vld [vmem:[%s2295_s22 + $0x20] sm:$0xff]   ;;  %v2192_v16 = vld [vmem:[%s2295_s22 + $0x28] sm:$0xff]  }
  0x14   : > { %2046 = vmatprep.subr.bf16.mxu0 %v2242_v1  ;;  %2106 = vmatprep.subr.bf16.mxu1 %v2242_v1  ;;  %v2189_v13 = vld [vmem:[%s2295_s22 + $0x7c] sm:$0xff]   ;;  %v2191_v15 = vld [vmem:[%s2295_s22 + $0x84] sm:$0xff]   ;;  %v2193_v17 = vld [vmem:[%s2295_s22 + $0x8c] sm:$0xff]  }
  0x15   : > { %v2194_v18 = vld [vmem:[%s2295_s22 + $0x30] sm:$0xff]   ;;  %v2196_v20 = vld [vmem:[%s2295_s22 + $0x38] sm:$0xff]   ;;  %v2198_v22 = vld [vmem:[%s2295_s22 + $0x40] sm:$0xff]  }
  0x16   : > { %1935 = vmatmul.mubr.msk.bf16.vlgmr.msra.gmra.mrb[0].mxu0 %vm261_vm2, %v2182_v6  ;;  %1995 = vmatmul.mubr.msk.bf16.vlgmr.msra.gmra.mrb[0].mxu1 %vm261_vm2, %v2183_v7  ;;  %v2195_v19 = vld [vmem:[%s2295_s22 + $0x94] sm:$0xff]   ;;  %v2197_v21 = vld [vmem:[%s2295_s22 + $0x9c] sm:$0xff]   ;;  %v2199_v23 = vld [vmem:[%s2295_s22 + $0xa4] sm:$0xff]  }
  0x17   : > { %2047 = vmatpush3.bf16.msra.mxu0 %v2178_v0  ;;  %2107 = vmatpush3.bf16.msra.mxu1 %v2178_v0  ;;  %v2200_v24 = vld [vmem:[%s2295_s22 + $0x48] sm:$0xff]   ;;  %v2202_v26 = vld [vmem:[%s2295_s22 + $0x50] sm:$0xff]   ;;  %v2204_v28 = vld [vmem:[%s2295_s22 + $0x58] sm:$0xff]  }
  0x18   : > { %1938 = vmatprep.mubr.msk.bf16.mxu0 %vm2243_vm0, %v2242_v1  ;;  %1998 = vmatprep.mubr.msk.bf16.mxu1 %vm2243_vm0, %v2242_v1  ;;  %v2201_v25 = vld [vmem:[%s2295_s22 + $0xac] sm:$0xff]   ;;  %v2203_v27 = vld [vmem:[%s2295_s22 + $0xb4] sm:$0xff]   ;;  %v2205_v29 = vld [vmem:[%s2295_s22 + $0xbc] sm:$0xff]  }
  0x19   : > { %2048 = vmatprep.subr.bf16.mxu0 %v2242_v1  ;;  %2108 = vmatprep.subr.bf16.mxu1 %v2242_v1  ;;  %v2206_v30 = vld [vmem:[%s2295_s22 + $0x60] ss:$0 sps:$4 sm:$0x33]   ;;  %v2207_v31 = vld [vmem:[%s2295_s22 + $0xc4] ss:$0 sps:$4 sm:$0x33]  }
  0x1a   : > { %v2208_v32 = vld [vmem:[%s2295_s22 + $0xc8] sm:$0xff]   ;;  %v2210_v34 = vld [vmem:[%s2295_s22 + $0xd0] sm:$0xff]   ;;  %v2212_v36 = vld [vmem:[%s2295_s22 + $0xd8] sm:$0xff]  }
  0x1b   : > { %2049 = vmatpush3.bf16.msra.mxu0 %v2179_v2  ;;  %2109 = vmatpush3.bf16.msra.mxu1 %v2179_v2  ;;  %v2209_v33 = vld [vmem:[%s2295_s22 + $0x12c] sm:$0xff]   ;;  %v2211_v35 = vld [vmem:[%s2295_s22 + $0x134] sm:$0xff]   ;;  %v2213_v37 = vld [vmem:[%s2295_s22 + $0x13c] sm:$0xff]  }
  0x1c   : > { %2050 = vmatprep.subr.bf16.mxu0 %v2242_v1  ;;  %2110 = vmatprep.subr.bf16.mxu1 %v2242_v1  ;;  %v2214_v38 = vld [vmem:[%s2295_s22 + $0xe0] sm:$0xff]   ;;  %v2216_v40 = vld [vmem:[%s2295_s22 + $0xe8] sm:$0xff]   ;;  %v2218_v42 = vld [vmem:[%s2295_s22 + $0xf0] sm:$0xff]  }
  0x1d   : > { %v2215_v39 = vld [vmem:[%s2295_s22 + $0x144] sm:$0xff]   ;;  %v2217_v41 = vld [vmem:[%s2295_s22 + $0x14c] sm:$0xff]   ;;  %v2219_v43 = vld [vmem:[%s2295_s22 + $0x154] sm:$0xff]  }
  0x1e   : > { %1939 = vmatmul.mubr.msk.bf16.gmra.mrb[4].mxu0 %vm261_vm2, %v2184_v8  ;;  %1999 = vmatmul.mubr.msk.bf16.gmra.mrb[4].mxu1 %vm261_vm2, %v2185_v9  ;;  %v2220_v44 = vld [vmem:[%s2295_s22 + $0xf8] sm:$0xff]   ;;  %v2222_v46 = vld [vmem:[%s2295_s22 + $0x100] sm:$0xff]   ;;  %v2224_v48 = vld [vmem:[%s2295_s22 + $0x108] sm:$0xff]  }
  0x1f   : > { %1942 = vmatprep.mubr.msk.bf16.mxu0 %vm2243_vm0, %v2242_v1  ;;  %2002 = vmatprep.mubr.msk.bf16.mxu1 %vm2243_vm0, %v2242_v1  ;;  %v2221_v45 = vld [vmem:[%s2295_s22 + $0x15c] sm:$0xff]   ;;  %v2223_v47 = vld [vmem:[%s2295_s22 + $0x164] sm:$0xff]   ;;  %v2225_v49 = vld [vmem:[%s2295_s22 + $0x16c] sm:$0xff]  }
  0x20   : > { %2051 = vmatpush3.bf16.msra.mxu0 %v2180_v3  ;;  %2111 = vmatpush3.bf16.msra.mxu1 %v2180_v3  ;;  %v2226_v50 = vld [vmem:[%s2295_s22 + $0x110] sm:$0xff]   ;;  %v2228_v52 = vld [vmem:[%s2295_s22 + $0x118] sm:$0xff]   ;;  %v2230_v54 = vld [vmem:[%s2295_s22 + $0x120] sm:$0xff]  }
  0x21   : > { %2052 = vmatprep.subr.bf16.mxu0 %v2242_v1  ;;  %2112 = vmatprep.subr.bf16.mxu1 %v2242_v1  ;;  %v2227_v51 = vld [vmem:[%s2295_s22 + $0x174] sm:$0xff]   ;;  %v2229_v53 = vld [vmem:[%s2295_s22 + $0x17c] sm:$0xff]   ;;  %v2231_v55 = vld [vmem:[%s2295_s22 + $0x184] sm:$0xff]  }
  0x22   : > { %v2232_v56 = vld [vmem:[%s2295_s22 + $0x128] ss:$0 sps:$4 sm:$0x33]   ;;  %v2233_v57 = vld [vmem:[%s2295_s22 + $0x18c] ss:$0 sps:$4 sm:$0x33]  }
  0x24   : > { %2053 = vmatpush3.bf16.msra.mxu0 %v303_v5  ;;  %2113 = vmatpush3.bf16.msra.mxu1 %v303_v5 }
  0x26   : > { %1943 = vmatmul.mubr.msk.bf16.gmra.mrb[8].mxu0 %vm261_vm2, %v2186_v10  ;;  %2003 = vmatmul.mubr.msk.bf16.gmra.mrb[8].mxu1 %vm261_vm2, %v2187_v11 }
  0x27   : > { %1946 = vmatprep.mubr.msk.bf16.mxu0 %vm2243_vm0, %v2242_v1  ;;  %2006 = vmatprep.mubr.msk.bf16.mxu1 %vm2243_vm0, %v2242_v1 }
  0x2e   : > { %1947 = vmatmul.mubr.msk.bf16.gmra.mrb[12].mxu0 %vm261_vm2, %v2188_v12  ;;  %2007 = vmatmul.mubr.msk.bf16.gmra.mrb[12].mxu1 %vm261_vm2, %v2189_v13 }
  0x2f   : > { %1950 = vmatprep.mubr.msk.bf16.mxu0 %vm2243_vm0, %v2242_v1  ;;  %2010 = vmatprep.mubr.msk.bf16.mxu1 %vm2243_vm0, %v2242_v1 }
  0x36   : > { %1951 = vmatmul.mubr.msk.bf16.gmra.mrb[16].mxu0 %vm261_vm2, %v2190_v14  ;;  %2011 = vmatmul.mubr.msk.bf16.gmra.mrb[16].mxu1 %vm261_vm2, %v2191_v15 }
  0x37   : > { %1954 = vmatprep.mubr.msk.bf16.mxu0 %vm2243_vm0, %v2242_v1  ;;  %2014 = vmatprep.mubr.msk.bf16.mxu1 %vm2243_vm0, %v2242_v1 }
  0x3e   : > { %1955 = vmatmul.mubr.msk.bf16.gmra.mrb[20].mxu0 %vm261_vm2, %v2192_v16  ;;  %2015 = vmatmul.mubr.msk.bf16.gmra.mrb[20].mxu1 %vm261_vm2, %v2193_v17 }
  0x3f   : > { %1958 = vmatprep.mubr.msk.bf16.mxu0 %vm2243_vm0, %v2242_v1  ;;  %2018 = vmatprep.mubr.msk.bf16.mxu1 %vm2243_vm0, %v2242_v1 }
  0x46   : > { %1959 = vmatmul.mubr.msk.bf16.gmra.mrb[24].mxu0 %vm261_vm2, %v2194_v18  ;;  %2019 = vmatmul.mubr.msk.bf16.gmra.mrb[24].mxu1 %vm261_vm2, %v2195_v19 }
  0x47   : > { %1962 = vmatprep.mubr.msk.bf16.mxu0 %vm2243_vm0, %v2242_v1  ;;  %2022 = vmatprep.mubr.msk.bf16.mxu1 %vm2243_vm0, %v2242_v1 }
  0x4e   : > { %1963 = vmatmul.mubr.msk.bf16.gmra.mrb[28].mxu0 %vm261_vm2, %v2196_v20  ;;  %2023 = vmatmul.mubr.msk.bf16.gmra.mrb[28].mxu1 %vm261_vm2, %v2197_v21 }
  0x4f   : > { %1966 = vmatprep.mubr.msk.bf16.mxu0 %vm2243_vm0, %v2242_v1  ;;  %2026 = vmatprep.mubr.msk.bf16.mxu1 %vm2243_vm0, %v2242_v1 }
  0x56   : > { %1967 = vmatmul.mubr.msk.bf16.gmra.mrb[32].mxu0 %vm261_vm2, %v2198_v22  ;;  %2027 = vmatmul.mubr.msk.bf16.gmra.mrb[32].mxu1 %vm261_vm2, %v2199_v23 }
  0x57   : > { %1970 = vmatprep.mubr.msk.bf16.mxu0 %vm2243_vm0, %v2242_v1  ;;  %2030 = vmatprep.mubr.msk.bf16.mxu1 %vm2243_vm0, %v2242_v1 }
  0x5e   : > { %1971 = vmatmul.mubr.msk.bf16.gmra.mrb[36].mxu0 %vm261_vm2, %v2200_v24  ;;  %2031 = vmatmul.mubr.msk.bf16.gmra.mrb[36].mxu1 %vm261_vm2, %v2201_v25 }
  0x5f   : > { %1974 = vmatprep.mubr.msk.bf16.mxu0 %vm2243_vm0, %v2242_v1  ;;  %2034 = vmatprep.mubr.msk.bf16.mxu1 %vm2243_vm0, %v2242_v1 }
  0x66   : > { %1975 = vmatmul.mubr.msk.bf16.gmra.mrb[40].mxu0 %vm261_vm2, %v2202_v26  ;;  %2035 = vmatmul.mubr.msk.bf16.gmra.mrb[40].mxu1 %vm261_vm2, %v2203_v27 }
  0x67   : > { %1978 = vmatprep.mubr.msk.bf16.mxu0 %vm2243_vm0, %v2242_v1  ;;  %2038 = vmatprep.mubr.msk.bf16.mxu1 %vm2243_vm0, %v2242_v1 }
  0x6e   : > { %1979 = vmatmul.mubr.msk.bf16.gmra.mrb[44].mxu0 %vm261_vm2, %v2204_v28  ;;  %2039 = vmatmul.mubr.msk.bf16.gmra.mrb[44].mxu1 %vm261_vm2, %v2205_v29 }
  0x6f   : > { %1982 = vmatprep.mubr.msk.bf16.mxu0 %vm2243_vm0, %v2242_v1  ;;  %2042 = vmatprep.mubr.msk.bf16.mxu1 %vm2243_vm0, %v2242_v1 }
  0x76   : > { %1983 = vmatmul.mubr.msk.bf16.gmra.mrb[48].mxu0 %vm261_vm2, %v2206_v30  ;;  %2043 = vmatmul.mubr.msk.bf16.gmra.mrb[48].mxu1 %vm261_vm2, %v2207_v31 }
  0x77   : > { %2054 = vmatprep.mubr.msk.bf16.mxu0 %vm2243_vm0, %v2242_v1  ;;  %2114 = vmatprep.mubr.msk.bf16.mxu1 %vm2243_vm0, %v2242_v1 }
  0x7e   : > { %2055 = vmatmul.mubr.msk.bf16.vlgmr.msra.gmra.mrb[52].mxu0 %vm261_vm2, %v2208_v32  ;;  %2115 = vmatmul.mubr.msk.bf16.vlgmr.msra.gmra.mrb[52].mxu1 %vm261_vm2, %v2209_v33 }
  0x7f   : > { %2058 = vmatprep.mubr.msk.bf16.mxu0 %vm2243_vm0, %v2242_v1  ;;  %2118 = vmatprep.mubr.msk.bf16.mxu1 %vm2243_vm0, %v2242_v1 }
  0x86   : > { %2059 = vmatmul.mubr.msk.bf16.gmra.mrb[56].mxu0 %vm261_vm2, %v2210_v34  ;;  %2119 = vmatmul.mubr.msk.bf16.gmra.mrb[56].mxu1 %vm261_vm2, %v2211_v35 }
  0x87   : > { %2062 = vmatprep.mubr.msk.bf16.mxu0 %vm2243_vm0, %v2242_v1  ;;  %2122 = vmatprep.mubr.msk.bf16.mxu1 %vm2243_vm0, %v2242_v1 }
  0x8e   : > { %2063 = vmatmul.mubr.msk.bf16.gmra.mrb[60].mxu0 %vm261_vm2, %v2212_v36  ;;  %2123 = vmatmul.mubr.msk.bf16.gmra.mrb[60].mxu1 %vm261_vm2, %v2213_v37 }
  0x8f   : > { %2066 = vmatprep.mubr.msk.bf16.mxu0 %vm2243_vm0, %v2242_v1  ;;  %2126 = vmatprep.mubr.msk.bf16.mxu1 %vm2243_vm0, %v2242_v1 }
  0x96   : > { %2067 = vmatmul.mubr.msk.bf16.gmra.mrb[64].mxu0 %vm261_vm2, %v2214_v38  ;;  %2127 = vmatmul.mubr.msk.bf16.gmra.mrb[64].mxu1 %vm261_vm2, %v2215_v39 }
  0x97   : > { %2070 = vmatprep.mubr.msk.bf16.mxu0 %vm2243_vm0, %v2242_v1  ;;  %2130 = vmatprep.mubr.msk.bf16.mxu1 %vm2243_vm0, %v2242_v1 }
  0x9e   : > { %2071 = vmatmul.mubr.msk.bf16.gmra.mrb[68].mxu0 %vm261_vm2, %v2216_v40  ;;  %2131 = vmatmul.mubr.msk.bf16.gmra.mrb[68].mxu1 %vm261_vm2, %v2217_v41 }
  0x9f   : > { %2074 = vmatprep.mubr.msk.bf16.mxu0 %vm2243_vm0, %v2242_v1  ;;  %2134 = vmatprep.mubr.msk.bf16.mxu1 %vm2243_vm0, %v2242_v1 }
  0xa6   : > { %2075 = vmatmul.mubr.msk.bf16.gmra.mrb[72].mxu0 %vm261_vm2, %v2218_v42  ;;  %2135 = vmatmul.mubr.msk.bf16.gmra.mrb[72].mxu1 %vm261_vm2, %v2219_v43 }
  0xa7   : > { %2078 = vmatprep.mubr.msk.bf16.mxu0 %vm2243_vm0, %v2242_v1  ;;  %2138 = vmatprep.mubr.msk.bf16.mxu1 %vm2243_vm0, %v2242_v1 }
  0xae   : > { %2079 = vmatmul.mubr.msk.bf16.gmra.mrb[76].mxu0 %vm261_vm2, %v2220_v44  ;;  %2139 = vmatmul.mubr.msk.bf16.gmra.mrb[76].mxu1 %vm261_vm2, %v2221_v45 }
  0xaf   : > { %2082 = vmatprep.mubr.msk.bf16.mxu0 %vm2243_vm0, %v2242_v1  ;;  %2142 = vmatprep.mubr.msk.bf16.mxu1 %vm2243_vm0, %v2242_v1 }
  0xb6   : > { %2083 = vmatmul.mubr.msk.bf16.gmra.mrb[80].mxu0 %vm261_vm2, %v2222_v46  ;;  %2143 = vmatmul.mubr.msk.bf16.gmra.mrb[80].mxu1 %vm261_vm2, %v2223_v47 }
  0xb7   : > { %2086 = vmatprep.mubr.msk.bf16.mxu0 %vm2243_vm0, %v2242_v1  ;;  %2146 = vmatprep.mubr.msk.bf16.mxu1 %vm2243_vm0, %v2242_v1 }
  0xbe   : > { %2087 = vmatmul.mubr.msk.bf16.gmra.mrb[84].mxu0 %vm261_vm2, %v2224_v48  ;;  %2147 = vmatmul.mubr.msk.bf16.gmra.mrb[84].mxu1 %vm261_vm2, %v2225_v49 }
  0xbf   : > { %2090 = vmatprep.mubr.msk.bf16.mxu0 %vm2243_vm0, %v2242_v1  ;;  %2150 = vmatprep.mubr.msk.bf16.mxu1 %vm2243_vm0, %v2242_v1 }
  0xc6   : > { %2091 = vmatmul.mubr.msk.bf16.gmra.mrb[88].mxu0 %vm261_vm2, %v2226_v50  ;;  %2151 = vmatmul.mubr.msk.bf16.gmra.mrb[88].mxu1 %vm261_vm2, %v2227_v51 }
  0xc7   : > { %2094 = vmatprep.mubr.msk.bf16.mxu0 %vm2243_vm0, %v2242_v1  ;;  %2154 = vmatprep.mubr.msk.bf16.mxu1 %vm2243_vm0, %v2242_v1 }
  0xce   : > { %2095 = vmatmul.mubr.msk.bf16.gmra.mrb[92].mxu0 %vm261_vm2, %v2228_v52  ;;  %2155 = vmatmul.mubr.msk.bf16.gmra.mrb[92].mxu1 %vm261_vm2, %v2229_v53 }
  0xcf   : > { %2098 = vmatprep.mubr.msk.bf16.mxu0 %vm2243_vm0, %v2242_v1  ;;  %2158 = vmatprep.mubr.msk.bf16.mxu1 %vm2243_vm0, %v2242_v1 }
  0xd6   : > { %2099 = vmatmul.mubr.msk.bf16.gmra.mrb[96].mxu0 %vm261_vm2, %v2230_v54  ;;  %2159 = vmatmul.mubr.msk.bf16.gmra.mrb[96].mxu1 %vm261_vm2, %v2231_v55 }
  0xd7   : > { %2102 = vmatprep.mubr.msk.bf16.mxu0 %vm2243_vm0, %v2242_v1  ;;  %2162 = vmatprep.mubr.msk.bf16.mxu1 %vm2243_vm0, %v2242_v1 }
  0xde   : > { %2103 = vmatmul.mubr.msk.bf16.gmra.mrb[100].mxu0 %vm261_vm2, %v2232_v56  ;;  %2163 = vmatmul.mubr.msk.bf16.gmra.mrb[100].mxu1 %vm261_vm2, %v2233_v57 }
  0xe9   : > { %v339_v58 = vpop.f32.mrb[0].mxu0  ;;  %v628_v59 = vpop.f32.mrb[0].mxu1 }
  0xea   : > { %v441_v60 = vmax.f32 %v339_v58, 0.0  ;;  %v730_v61 = vmax.f32 %v628_v59, 0.0  ;;  %v1936_v62 = vpop.f32.mrb[1].mxu0  ;;  %v1996_v63 = vpop.f32.mrb[1].mxu1 }
  0xeb   : > { %v342_v0 = vpop.f32.mrb[2].mxu0  ;;  %v631_v2 = vpop.f32.mrb[2].mxu1 }
  0xec   : > { %v2511_v3 = vadd.f32 %v730_v61, %v441_v60  ;;  %v442_v4 = vmax.f32 %v342_v0, 0.0  ;;  %v731_v5 = vmax.f32 %v631_v2, 0.0  ;;  %v1937_v6 = vpop.f32.mrb[3].mxu0  ;;  %v1997_v1 = vpop.f32.mrb[3].mxu1 }
  0xee   : > { %v2513_v7 = vadd.f32 %v731_v5, %v442_v4 }
  0xf1   : > { %v347_v8 = vpop.f32.mrb[4].mxu0  ;;  %v636_v9 = vpop.f32.mrb[4].mxu1 }
  0xf2   : > { %v443_v10 = vmax.f32 %v347_v8, 0.0  ;;  %v732_v11 = vmax.f32 %v636_v9, 0.0  ;;  %v1940_v12 = vpop.f32.mrb[5].mxu0  ;;  %v2000_v13 = vpop.f32.mrb[5].mxu1 }
  0xf3   : > { %v350_v14 = vpop.f32.mrb[6].mxu0  ;;  %v639_v15 = vpop.f32.mrb[6].mxu1 }
  0xf4   : > { %v2515_v16 = vadd.f32 %v732_v11, %v443_v10  ;;  %v444_v17 = vmax.f32 %v350_v14, 0.0  ;;  %v733_v18 = vmax.f32 %v639_v15, 0.0  ;;  %v1941_v19 = vpop.f32.mrb[7].mxu0  ;;  %v2001_v20 = vpop.f32.mrb[7].mxu1 }
  0xf6   : > { %v2517_v21 = vadd.f32 %v733_v18, %v444_v17 }
  0xf9   : > { %v355_v22 = vpop.f32.mrb[8].mxu0  ;;  %v644_v23 = vpop.f32.mrb[8].mxu1 }
  0xfa   : > { %v445_v24 = vmax.f32 %v355_v22, 0.0  ;;  %v734_v25 = vmax.f32 %v644_v23, 0.0  ;;  %v1944_v26 = vpop.f32.mrb[9].mxu0  ;;  %v2004_v27 = vpop.f32.mrb[9].mxu1 }
  0xfb   : > { %v358_v28 = vpop.f32.mrb[10].mxu0  ;;  %v647_v29 = vpop.f32.mrb[10].mxu1 }
  0xfc   : > { %v2519_v30 = vadd.f32 %v734_v25, %v445_v24  ;;  %v446_v31 = vmax.f32 %v358_v28, 0.0  ;;  %v735_v32 = vmax.f32 %v647_v29, 0.0  ;;  %v1945_v33 = vpop.f32.mrb[11].mxu0  ;;  %v2005_v34 = vpop.f32.mrb[11].mxu1 }
  0xfe   : > { %v2521_v35 = vadd.f32 %v735_v32, %v446_v31 }
 0x101   : > { %v363_v36 = vpop.f32.mrb[12].mxu0  ;;  %v652_v37 = vpop.f32.mrb[12].mxu1 }
 0x102   : > { %v447_v38 = vmax.f32 %v363_v36, 0.0  ;;  %v736_v39 = vmax.f32 %v652_v37, 0.0  ;;  %v1948_v40 = vpop.f32.mrb[13].mxu0  ;;  %v2008_v41 = vpop.f32.mrb[13].mxu1 }
 0x103   : > { %v366_v42 = vpop.f32.mrb[14].mxu0  ;;  %v655_v43 = vpop.f32.mrb[14].mxu1 }
 0x104   : > { %v2523_v44 = vadd.f32 %v736_v39, %v447_v38  ;;  %v448_v45 = vmax.f32 %v366_v42, 0.0  ;;  %v737_v46 = vmax.f32 %v655_v43, 0.0  ;;  %v1949_v47 = vpop.f32.mrb[15].mxu0  ;;  %v2009_v48 = vpop.f32.mrb[15].mxu1 }
 0x106   : > { %v2525_v49 = vadd.f32 %v737_v46, %v448_v45 }
 0x109   : > { %v371_v50 = vpop.f32.mrb[16].mxu0  ;;  %v660_v51 = vpop.f32.mrb[16].mxu1 }
 0x10a   : > { %v449_v52 = vmax.f32 %v371_v50, 0.0  ;;  %v738_v53 = vmax.f32 %v660_v51, 0.0  ;;  %v1952_v54 = vpop.f32.mrb[17].mxu0  ;;  %v2012_v55 = vpop.f32.mrb[17].mxu1 }
 0x10b   : > { %v374_v56 = vpop.f32.mrb[18].mxu0  ;;  %v663_v57 = vpop.f32.mrb[18].mxu1 }
 0x10c   : > { %v2527_v58 = vadd.f32 %v738_v53, %v449_v52  ;;  %v450_v59 = vmax.f32 %v374_v56, 0.0  ;;  %v739_v60 = vmax.f32 %v663_v57, 0.0  ;;  %v1953_v61 = vpop.f32.mrb[19].mxu0  ;;  %v2013_v62 = vpop.f32.mrb[19].mxu1 }
 0x10e   : > { %v2529_v63 = vadd.f32 %v739_v60, %v450_v59 }
 0x111   : > { %v379_v0 = vpop.f32.mrb[20].mxu0  ;;  %v668_v2 = vpop.f32.mrb[20].mxu1 }
 0x112   : > { %v451_v4 = vmax.f32 %v379_v0, 0.0  ;;  %v740_v5 = vmax.f32 %v668_v2, 0.0  ;;  %v1956_v6 = vpop.f32.mrb[21].mxu0  ;;  %v2016_v1 = vpop.f32.mrb[21].mxu1 }
 0x113   : > { %v382_v8 = vpop.f32.mrb[22].mxu0  ;;  %v671_v9 = vpop.f32.mrb[22].mxu1 }
 0x114   : > { %v2531_v10 = vadd.f32 %v740_v5, %v451_v4  ;;  %v452_v11 = vmax.f32 %v382_v8, 0.0  ;;  %v741_v12 = vmax.f32 %v671_v9, 0.0  ;;  %v1957_v13 = vpop.f32.mrb[23].mxu0  ;;  %v2017_v14 = vpop.f32.mrb[23].mxu1 }
 0x116   : > { %v2533_v15 = vadd.f32 %v741_v12, %v452_v11 }
 0x119   : > { %v387_v17 = vpop.f32.mrb[24].mxu0  ;;  %v676_v18 = vpop.f32.mrb[24].mxu1 }
 0x11a   : > { %v453_v19 = vmax.f32 %v387_v17, 0.0  ;;  %v742_v20 = vmax.f32 %v676_v18, 0.0  ;;  %v1960_v22 = vpop.f32.mrb[25].mxu0  ;;  %v2020_v23 = vpop.f32.mrb[25].mxu1 }
 0x11b   : > { %v390_v24 = vpop.f32.mrb[26].mxu0  ;;  %v679_v25 = vpop.f32.mrb[26].mxu1 }
 0x11c   : > { %v2535_v26 = vadd.f32 %v742_v20, %v453_v19  ;;  %v454_v27 = vmax.f32 %v390_v24, 0.0  ;;  %v743_v28 = vmax.f32 %v679_v25, 0.0  ;;  %v1961_v29 = vpop.f32.mrb[27].mxu0  ;;  %v2021_v31 = vpop.f32.mrb[27].mxu1 }
 0x11e   : > { %v2537_v32 = vadd.f32 %v743_v28, %v454_v27 }
 0x121   : > { %v395_v33 = vpop.f32.mrb[28].mxu0  ;;  %v684_v34 = vpop.f32.mrb[28].mxu1 }
 0x122   : > { %v455_v36 = vmax.f32 %v395_v33, 0.0  ;;  %v744_v37 = vmax.f32 %v684_v34, 0.0  ;;  %v1964_v38 = vpop.f32.mrb[29].mxu0  ;;  %v2024_v39 = vpop.f32.mrb[29].mxu1 }
 0x123   : > { %v398_v40 = vpop.f32.mrb[30].mxu0  ;;  %v687_v41 = vpop.f32.mrb[30].mxu1 }
 0x124   : > { %v2539_v42 = vadd.f32 %v744_v37, %v455_v36  ;;  %v456_v43 = vmax.f32 %v398_v40, 0.0  ;;  %v745_v45 = vmax.f32 %v687_v41, 0.0  ;;  %v1965_v46 = vpop.f32.mrb[31].mxu0  ;;  %v2025_v47 = vpop.f32.mrb[31].mxu1 }
 0x126   : > { %v2541_v48 = vadd.f32 %v745_v45, %v456_v43 }
 0x129   : > { %v403_v50 = vpop.f32.mrb[32].mxu0  ;;  %v692_v51 = vpop.f32.mrb[32].mxu1 }
 0x12a   : > { %v457_v52 = vmax.f32 %v403_v50, 0.0  ;;  %v746_v53 = vmax.f32 %v692_v51, 0.0  ;;  %v1968_v54 = vpop.f32.mrb[33].mxu0  ;;  %v2028_v55 = vpop.f32.mrb[33].mxu1 }
 0x12b   : > { %v406_v56 = vpop.f32.mrb[34].mxu0  ;;  %v695_v57 = vpop.f32.mrb[34].mxu1 }
 0x12c   : > { %v2543_v59 = vadd.f32 %v746_v53, %v457_v52  ;;  %v458_v60 = vmax.f32 %v406_v56, 0.0  ;;  %v747_v61 = vmax.f32 %v695_v57, 0.0  ;;  %v1969_v62 = vpop.f32.mrb[35].mxu0  ;;  %v2029_v0 = vpop.f32.mrb[35].mxu1 }
 0x12e   : > { %v2545_v2 = vadd.f32 %v747_v61, %v458_v60 }
 0x131   : > { %v411_v4 = vpop.f32.mrb[36].mxu0  ;;  %v700_v5 = vpop.f32.mrb[36].mxu1 }
 0x132   : > { %v459_v6 = vmax.f32 %v411_v4, 0.0  ;;  %v748_v1 = vmax.f32 %v700_v5, 0.0  ;;  %v1972_v8 = vpop.f32.mrb[37].mxu0  ;;  %v2032_v9 = vpop.f32.mrb[37].mxu1 }
 0x133   : > { %v414_v11 = vpop.f32.mrb[38].mxu0  ;;  %v703_v12 = vpop.f32.mrb[38].mxu1 }
 0x134   : > { %v2547_v13 = vadd.f32 %v748_v1, %v459_v6  ;;  %v460_v14 = vmax.f32 %v414_v11, 0.0  ;;  %v749_v17 = vmax.f32 %v703_v12, 0.0  ;;  %v1973_v18 = vpop.f32.mrb[39].mxu0  ;;  %v2033_v19 = vpop.f32.mrb[39].mxu1 }
 0x136   : > { %v2549_v20 = vadd.f32 %v749_v17, %v460_v14 }
 0x139   : > { %v419_v22 = vpop.f32.mrb[40].mxu0  ;;  %v708_v23 = vpop.f32.mrb[40].mxu1 }
 0x13a   : > { %v461_v24 = vmax.f32 %v419_v22, 0.0  ;;  %v750_v25 = vmax.f32 %v708_v23, 0.0  ;;  %v1976_v27 = vpop.f32.mrb[41].mxu0  ;;  %v2036_v28 = vpop.f32.mrb[41].mxu1 }
 0x13b   : > { %v422_v29 = vpop.f32.mrb[42].mxu0  ;;  %v711_v31 = vpop.f32.mrb[42].mxu1 }
 0x13c   : > { %v2551_v33 = vadd.f32 %v750_v25, %v461_v24  ;;  %v462_v34 = vmax.f32 %v422_v29, 0.0  ;;  %v751_v36 = vmax.f32 %v711_v31, 0.0  ;;  %v1977_v37 = vpop.f32.mrb[43].mxu0  ;;  %v2037_v38 = vpop.f32.mrb[43].mxu1 }
 0x13e   : > { %v2553_v39 = vadd.f32 %v751_v36, %v462_v34 }
 0x141   : > { %v427_v40 = vpop.f32.mrb[44].mxu0  ;;  %v716_v41 = vpop.f32.mrb[44].mxu1 }
 0x142   : > { %v463_v43 = vmax.f32 %v427_v40, 0.0  ;;  %v752_v45 = vmax.f32 %v716_v41, 0.0  ;;  %v1980_v46 = vpop.f32.mrb[45].mxu0  ;;  %v2040_v47 = vpop.f32.mrb[45].mxu1 }
 0x143   : > { %v430_v50 = vpop.f32.mrb[46].mxu0  ;;  %v719_v51 = vpop.f32.mrb[46].mxu1 }
 0x144   : > { %v2555_v52 = vadd.f32 %v752_v45, %v463_v43  ;;  %v464_v53 = vmax.f32 %v430_v50, 0.0  ;;  %v753_v54 = vmax.f32 %v719_v51, 0.0  ;;  %v1981_v55 = vpop.f32.mrb[47].mxu0  ;;  %v2041_v56 = vpop.f32.mrb[47].mxu1 }
 0x146   : > { %v2557_v57 = vadd.f32 %v753_v54, %v464_v53 }
 0x149   : > { %v435_v60 = vpop.f32.mrb[48].mxu0  ;;  %v724_v61 = vpop.f32.mrb[48].mxu1 }
 0x14a   : > { %v465_v62 = vmax.f32 %v435_v60, 0.0  ;;  %v754_v0 = vmax.f32 %v724_v61, 0.0  ;;  %v1984_v4 = vpop.f32.mrb[49].mxu0  ;;  %v2044_v5 = vpop.f32.mrb[49].mxu1 }
 0x14b   : > { %v438_v6 = vpop.f32.mrb[50].mxu0  ;;  %v727_v1 = vpop.f32.mrb[50].mxu1 }
 0x14c   : > { %v2559_v8 = vadd.f32 %v754_v0, %v465_v62  ;;  %v1985_v9 = vpop.f32.mrb[51].mxu0  ;;  %v2045_v11 = vpop.f32.mrb[51].mxu1 }
 0x151   : > { %v942_v12 = vpop.f32.mrb[52].mxu0  ;;  %v1256_v14 = vpop.f32.mrb[52].mxu1 }
 0x152   : > { %v1044_v17 = vmax.f32 %v942_v12, 0.0  ;;  %v1358_v18 = vmax.f32 %v1256_v14, 0.0  ;;  %v2056_v19 = vpop.f32.mrb[53].mxu0  ;;  %v2116_v22 = vpop.f32.mrb[53].mxu1 }
 0x153   : > { %v945_v23 = vpop.f32.mrb[54].mxu0  ;;  %v1259_v24 = vpop.f32.mrb[54].mxu1 }
 0x154   : > { %v1069_v25 = vadd.f32 %v1044_v17, %v2511_v3  ;;  %v1045_v27 = vmax.f32 %v945_v23, 0.0  ;;  %v2057_v28 = vpop.f32.mrb[55].mxu0  ;;  %v2117_v29 = vpop.f32.mrb[55].mxu1  ;;  %v1359_v36 = vmax.f32 %v1259_v24, 0.0 }
 0x156   : > { %v1383_v31 = vadd.f32 %v1358_v18, %v1069_v25  ;;  %v1070_v34 = vadd.f32 %v1045_v27, %v2513_v7 }
 0x158   : > { %v1408_v37 = vmul.f32 0.25, %v1383_v31  ;;  %v1384_v38 = vadd.f32 %v1359_v36, %v1070_v34 }
 0x159   : > { %v950_v40 = vpop.f32.mrb[56].mxu0  ;;  %v1264_v3 = vpop.f32.mrb[56].mxu1 }
 0x15a   : > { %v1833_v41 = vpack.c.bf16 %v1408_v37, %v1408_v37  ;;  %v1409_v43 = vmul.f32 0.25, %v1384_v38  ;;  %v1046_v45 = vmax.f32 %v950_v40, 0.0  ;;  %v1360_v46 = vmax.f32 %v1264_v3, 0.0  ;;  %v2060_v47 = vpop.f32.mrb[57].mxu0  ;;  %v2120_v50 = vpop.f32.mrb[57].mxu1 }
 0x15b   : > { %v953_v7 = vpop.f32.mrb[58].mxu0  ;;  %v1267_v51 = vpop.f32.mrb[58].mxu1 }
 0x15c   : > { %1535 = vst.msk [vmem:[%s2567_s26] sm:$0xf] %vm1534_vm3, %v1833_v41  ;;  %v1834_v53 = vpack.c.bf16 %v1409_v43, %v1409_v43  ;;  %v1071_v54 = vadd.f32 %v1046_v45, %v2515_v16  ;;  %v1047_v55 = vmax.f32 %v953_v7, 0.0  ;;  %v2061_v56 = vpop.f32.mrb[59].mxu0  ;;  %v2121_v60 = vpop.f32.mrb[59].mxu1  ;;  %v1361_v0 = vmax.f32 %v1267_v51, 0.0 }
 0x15e   : > { %1536 = vst.msk [vmem:[%s2567_s26 + $0x4] sm:$0xf] %vm1534_vm3, %v1834_v53  ;;  %v1385_v61 = vadd.f32 %v1360_v46, %v1071_v54  ;;  %v1072_v62 = vadd.f32 %v1047_v55, %v2517_v21 }
 0x160   : > { %v1410_v4 = vmul.f32 0.25, %v1385_v61  ;;  %v1386_v5 = vadd.f32 %v1361_v0, %v1072_v62 }
 0x161   : > { %v958_v6 = vpop.f32.mrb[60].mxu0  ;;  %v1272_v1 = vpop.f32.mrb[60].mxu1 }
 0x162   : > { %v1835_v9 = vpack.c.bf16 %v1410_v4, %v1410_v4  ;;  %v1411_v11 = vmul.f32 0.25, %v1386_v5  ;;  %v1048_v12 = vmax.f32 %v958_v6, 0.0  ;;  %v1362_v14 = vmax.f32 %v1272_v1, 0.0  ;;  %v2064_v16 = vpop.f32.mrb[61].mxu0  ;;  %v2124_v17 = vpop.f32.mrb[61].mxu1 }
 0x163   : > { %v961_v18 = vpop.f32.mrb[62].mxu0  ;;  %v1275_v19 = vpop.f32.mrb[62].mxu1 }
 0x164   : > { %1537 = vst.msk [vmem:[%s2567_s26 + $0x8] sm:$0xf] %vm1534_vm3, %v1835_v9  ;;  %v1836_v22 = vpack.c.bf16 %v1411_v11, %v1411_v11  ;;  %v1073_v23 = vadd.f32 %v1048_v12, %v2519_v30  ;;  %v1049_v21 = vmax.f32 %v961_v18, 0.0  ;;  %v2065_v24 = vpop.f32.mrb[63].mxu0  ;;  %v2125_v25 = vpop.f32.mrb[63].mxu1  ;;  %v1363_v29 = vmax.f32 %v1275_v19, 0.0 }
 0x166   : > { %1538 = vst.msk [vmem:[%s2567_s26 + $0xc] sm:$0xf] %vm1534_vm3, %v1836_v22  ;;  %v1387_v27 = vadd.f32 %v1362_v14, %v1073_v23  ;;  %v1074_v28 = vadd.f32 %v1049_v21, %v2521_v35 }
 0x168   : > { %v1412_v31 = vmul.f32 0.25, %v1387_v27  ;;  %v1388_v34 = vadd.f32 %v1363_v29, %v1074_v28 }
 0x169   : > { %v966_v36 = vpop.f32.mrb[64].mxu0  ;;  %v1280_v37 = vpop.f32.mrb[64].mxu1 }
 0x16a   : > { %v1837_v38 = vpack.c.bf16 %v1412_v31, %v1412_v31  ;;  %v1413_v40 = vmul.f32 0.25, %v1388_v34  ;;  %v1050_v3 = vmax.f32 %v966_v36, 0.0  ;;  %v1364_v41 = vmax.f32 %v1280_v37, 0.0  ;;  %v2068_v30 = vpop.f32.mrb[65].mxu0  ;;  %v2128_v43 = vpop.f32.mrb[65].mxu1 }
 0x16b   : > { %v969_v45 = vpop.f32.mrb[66].mxu0  ;;  %v1283_v46 = vpop.f32.mrb[66].mxu1 }
 0x16c   : > { %1539 = vst.msk [vmem:[%s2567_s26 + $0x10] sm:$0xf] %vm1534_vm3, %v1837_v38  ;;  %v1838_v47 = vpack.c.bf16 %v1413_v40, %v1413_v40  ;;  %v1075_v50 = vadd.f32 %v1050_v3, %v2523_v44  ;;  %v1051_v35 = vmax.f32 %v969_v45, 0.0  ;;  %v2069_v7 = vpop.f32.mrb[67].mxu0  ;;  %v2129_v51 = vpop.f32.mrb[67].mxu1  ;;  %v1365_v55 = vmax.f32 %v1283_v46, 0.0 }
 0x16e   : > { %1540 = vst.msk [vmem:[%s2567_s26 + $0x14] sm:$0xf] %vm1534_vm3, %v1838_v47  ;;  %v1389_v53 = vadd.f32 %v1364_v41, %v1075_v50  ;;  %v1076_v54 = vadd.f32 %v1051_v35, %v2525_v49 }
 0x170   : > { %v1414_v56 = vmul.f32 0.25, %v1389_v53  ;;  %v1390_v60 = vadd.f32 %v1365_v55, %v1076_v54 }
 0x171   : > { %v974_v61 = vpop.f32.mrb[68].mxu0  ;;  %v1288_v62 = vpop.f32.mrb[68].mxu1 }
 0x172   : > { %v1839_v0 = vpack.c.bf16 %v1414_v56, %v1414_v56  ;;  %v1415_v4 = vmul.f32 0.25, %v1390_v60  ;;  %v1052_v5 = vmax.f32 %v974_v61, 0.0  ;;  %v1366_v6 = vmax.f32 %v1288_v62, 0.0  ;;  %v2072_v44 = vpop.f32.mrb[69].mxu0  ;;  %v2132_v1 = vpop.f32.mrb[69].mxu1 }
 0x173   : > { %v977_v9 = vpop.f32.mrb[70].mxu0  ;;  %v1291_v11 = vpop.f32.mrb[70].mxu1 }
 0x174   : > { %1541 = vst.msk [vmem:[%s2567_s26 + $0x18] sm:$0xf] %vm1534_vm3, %v1839_v0  ;;  %v1840_v12 = vpack.c.bf16 %v1415_v4, %v1415_v4  ;;  %v1077_v14 = vadd.f32 %v1052_v5, %v2527_v58  ;;  %v1053_v49 = vmax.f32 %v977_v9, 0.0  ;;  %v2073_v16 = vpop.f32.mrb[71].mxu0  ;;  %v2133_v17 = vpop.f32.mrb[71].mxu1  ;;  %v1367_v22 = vmax.f32 %v1291_v11, 0.0 }
 0x176   : > { %1542 = vst.msk [vmem:[%s2567_s26 + $0x1c] sm:$0xf] %vm1534_vm3, %v1840_v12  ;;  %v1391_v18 = vadd.f32 %v1366_v6, %v1077_v14  ;;  %v1078_v19 = vadd.f32 %v1053_v49, %v2529_v63 }
 0x178   : > { %v1416_v23 = vmul.f32 0.25, %v1391_v18  ;;  %v1392_v21 = vadd.f32 %v1367_v22, %v1078_v19 }
 0x179   : > { %v982_v24 = vpop.f32.mrb[72].mxu0  ;;  %v1296_v25 = vpop.f32.mrb[72].mxu1 }
 0x17a   : > { %v1841_v27 = vpack.c.bf16 %v1416_v23, %v1416_v23  ;;  %v1417_v28 = vmul.f32 0.25, %v1392_v21  ;;  %v1054_v29 = vmax.f32 %v982_v24, 0.0  ;;  %v1368_v31 = vmax.f32 %v1296_v25, 0.0  ;;  %v2076_v58 = vpop.f32.mrb[73].mxu0  ;;  %v2136_v34 = vpop.f32.mrb[73].mxu1 }
 0x17b   : > { %v985_v36 = vpop.f32.mrb[74].mxu0  ;;  %v1299_v37 = vpop.f32.mrb[74].mxu1 }
 0x17c   : > { %1543 = vst.msk [vmem:[%s2567_s26 + $0x20] sm:$0xf] %vm1534_vm3, %v1841_v27  ;;  %v1842_v38 = vpack.c.bf16 %v1417_v28, %v1417_v28  ;;  %v1079_v40 = vadd.f32 %v1054_v29, %v2531_v10  ;;  %v1055_v63 = vmax.f32 %v985_v36, 0.0  ;;  %v2077_v3 = vpop.f32.mrb[75].mxu0  ;;  %v2137_v41 = vpop.f32.mrb[75].mxu1  ;;  %v1369_v45 = vmax.f32 %v1299_v37, 0.0 }
 0x17e   : > { %1544 = vst.msk [vmem:[%s2567_s26 + $0x24] sm:$0xf] %vm1534_vm3, %v1842_v38  ;;  %v1393_v30 = vadd.f32 %v1368_v31, %v1079_v40  ;;  %v1080_v43 = vadd.f32 %v1055_v63, %v2533_v15 }
 0x180   : > { %v1418_v46 = vmul.f32 0.25, %v1393_v30  ;;  %v1394_v47 = vadd.f32 %v1369_v45, %v1080_v43 }
 0x181   : > { %v990_v50 = vpop.f32.mrb[76].mxu0  ;;  %v1304_v35 = vpop.f32.mrb[76].mxu1 }
 0x182   : > { %v1843_v7 = vpack.c.bf16 %v1418_v46, %v1418_v46  ;;  %v1419_v51 = vmul.f32 0.25, %v1394_v47  ;;  %v1056_v53 = vmax.f32 %v990_v50, 0.0  ;;  %v1370_v54 = vmax.f32 %v1304_v35, 0.0  ;;  %v2080_v10 = vpop.f32.mrb[77].mxu0  ;;  %v2140_v55 = vpop.f32.mrb[77].mxu1 }
 0x183   : > { %v993_v56 = vpop.f32.mrb[78].mxu0  ;;  %v1307_v60 = vpop.f32.mrb[78].mxu1 }
 0x184   : > { %1545 = vst.msk [vmem:[%s2567_s26 + $0x28] sm:$0xf] %vm1534_vm3, %v1843_v7  ;;  %v1844_v61 = vpack.c.bf16 %v1419_v51, %v1419_v51  ;;  %v1081_v62 = vadd.f32 %v1056_v53, %v2535_v26  ;;  %v1057_v15 = vmax.f32 %v993_v56, 0.0  ;;  %v2081_v0 = vpop.f32.mrb[79].mxu0  ;;  %v2141_v4 = vpop.f32.mrb[79].mxu1  ;;  %v1371_v44 = vmax.f32 %v1307_v60, 0.0 }
 0x186   : > { %1546 = vst.msk [vmem:[%s2567_s26 + $0x2c] sm:$0xf] %vm1534_vm3, %v1844_v61  ;;  %v1395_v5 = vadd.f32 %v1370_v54, %v1081_v62  ;;  %v1082_v6 = vadd.f32 %v1057_v15, %v2537_v32 }
 0x188   : > { %v1420_v1 = vmul.f32 0.25, %v1395_v5  ;;  %v1396_v9 = vadd.f32 %v1371_v44, %v1082_v6 }
 0x189   : > { %v998_v11 = vpop.f32.mrb[80].mxu0  ;;  %v1312_v12 = vpop.f32.mrb[80].mxu1 }
 0x18a   : > { %v1845_v14 = vpack.c.bf16 %v1420_v1, %v1420_v1  ;;  %v1421_v49 = vmul.f32 0.25, %v1396_v9  ;;  %v1058_v16 = vmax.f32 %v998_v11, 0.0  ;;  %v1372_v17 = vmax.f32 %v1312_v12, 0.0  ;;  %v2084_v26 = vpop.f32.mrb[81].mxu0  ;;  %v2144_v18 = vpop.f32.mrb[81].mxu1 }
 0x18b   : > { %v1001_v19 = vpop.f32.mrb[82].mxu0  ;;  %v1315_v22 = vpop.f32.mrb[82].mxu1 }
 0x18c   : > { %1547 = vst.msk [vmem:[%s2567_s26 + $0x30] sm:$0xf] %vm1534_vm3, %v1845_v14  ;;  %v1846_v23 = vpack.c.bf16 %v1421_v49, %v1421_v49  ;;  %v1083_v21 = vadd.f32 %v1058_v16, %v2539_v42  ;;  %v1059_v32 = vmax.f32 %v1001_v19, 0.0  ;;  %v2085_v24 = vpop.f32.mrb[83].mxu0  ;;  %v2145_v25 = vpop.f32.mrb[83].mxu1  ;;  %v1373_v29 = vmax.f32 %v1315_v22, 0.0 }
 0x18e   : > { %1548 = vst.msk [vmem:[%s2567_s26 + $0x34] sm:$0xf] %vm1534_vm3, %v1846_v23  ;;  %v1397_v27 = vadd.f32 %v1372_v17, %v1083_v21  ;;  %v1084_v28 = vadd.f32 %v1059_v32, %v2541_v48 }
 0x190   : > { %v1422_v31 = vmul.f32 0.25, %v1397_v27  ;;  %v1398_v58 = vadd.f32 %v1373_v29, %v1084_v28 }
 0x191   : > { %v1006_v34 = vpop.f32.mrb[84].mxu0  ;;  %v1320_v36 = vpop.f32.mrb[84].mxu1 }
 0x192   : > { %v1847_v37 = vpack.c.bf16 %v1422_v31, %v1422_v31  ;;  %v1423_v38 = vmul.f32 0.25, %v1398_v58  ;;  %v1060_v40 = vmax.f32 %v1006_v34, 0.0  ;;  %v1374_v63 = vmax.f32 %v1320_v36, 0.0  ;;  %v2088_v42 = vpop.f32.mrb[85].mxu0  ;;  %v2148_v3 = vpop.f32.mrb[85].mxu1 }
 0x193   : > { %v1009_v41 = vpop.f32.mrb[86].mxu0  ;;  %v1323_v30 = vpop.f32.mrb[86].mxu1 }
 0x194   : > { %1549 = vst.msk [vmem:[%s2567_s26 + $0x38] sm:$0xf] %vm1534_vm3, %v1847_v37  ;;  %v1848_v43 = vpack.c.bf16 %v1423_v38, %v1423_v38  ;;  %v1085_v45 = vadd.f32 %v1060_v40, %v2543_v59  ;;  %v1061_v48 = vmax.f32 %v1009_v41, 0.0  ;;  %v2089_v46 = vpop.f32.mrb[87].mxu0  ;;  %v2149_v47 = vpop.f32.mrb[87].mxu1  ;;  %v1375_v7 = vmax.f32 %v1323_v30, 0.0 }
 0x196   : > { %1550 = vst.msk [vmem:[%s2567_s26 + $0x3c] sm:$0xf] %vm1534_vm3, %v1848_v43  ;;  %v1399_v50 = vadd.f32 %v1374_v63, %v1085_v45  ;;  %v1086_v35 = vadd.f32 %v1061_v48, %v2545_v2 }
 0x198   : > { %v1424_v51 = vmul.f32 0.25, %v1399_v50  ;;  %v1400_v53 = vadd.f32 %v1375_v7, %v1086_v35 }
 0x199   : > { %v1014_v54 = vpop.f32.mrb[88].mxu0  ;;  %v1328_v10 = vpop.f32.mrb[88].mxu1 }
 0x19a   : > { %v1849_v55 = vpack.c.bf16 %v1424_v51, %v1424_v51  ;;  %v1425_v56 = vmul.f32 0.25, %v1400_v53  ;;  %v1062_v60 = vmax.f32 %v1014_v54, 0.0  ;;  %v1376_v61 = vmax.f32 %v1328_v10, 0.0  ;;  %v2092_v59 = vpop.f32.mrb[89].mxu0  ;;  %v2152_v62 = vpop.f32.mrb[89].mxu1 }
 0x19b   : > { %v1017_v15 = vpop.f32.mrb[90].mxu0  ;;  %v1331_v0 = vpop.f32.mrb[90].mxu1 }
 0x19c   : > { %1551 = vst.msk [vmem:[%s2567_s26 + $0x40] sm:$0xf] %vm1534_vm3, %v1849_v55  ;;  %v1850_v4 = vpack.c.bf16 %v1425_v56, %v1425_v56  ;;  %v1087_v5 = vadd.f32 %v1062_v60, %v2547_v13  ;;  %v1063_v2 = vmax.f32 %v1017_v15, 0.0  ;;  %v2093_v6 = vpop.f32.mrb[91].mxu0  ;;  %v2153_v44 = vpop.f32.mrb[91].mxu1  ;;  %v1377_v11 = vmax.f32 %v1331_v0, 0.0 }
 0x19e   : > { %1552 = vst.msk [vmem:[%s2567_s26 + $0x44] sm:$0xf] %vm1534_vm3, %v1850_v4  ;;  %v1401_v1 = vadd.f32 %v1376_v61, %v1087_v5  ;;  %v1088_v9 = vadd.f32 %v1063_v2, %v2549_v20 }
 0x1a0   : > { %v1426_v12 = vmul.f32 0.25, %v1401_v1  ;;  %v1402_v14 = vadd.f32 %v1377_v11, %v1088_v9 }
 0x1a1   : > { %v1022_v49 = vpop.f32.mrb[92].mxu0  ;;  %v1336_v16 = vpop.f32.mrb[92].mxu1 }
 0x1a2   : > { %v1851_v17 = vpack.c.bf16 %v1426_v12, %v1426_v12  ;;  %v1427_v26 = vmul.f32 0.25, %v1402_v14  ;;  %v1064_v18 = vmax.f32 %v1022_v49, 0.0  ;;  %v1378_v19 = vmax.f32 %v1336_v16, 0.0  ;;  %v2096_v13 = vpop.f32.mrb[93].mxu0  ;;  %v2156_v22 = vpop.f32.mrb[93].mxu1 }
 0x1a3   : > { %v1025_v23 = vpop.f32.mrb[94].mxu0  ;;  %v1339_v21 = vpop.f32.mrb[94].mxu1 }
 0x1a4   : > { %1553 = vst.msk [vmem:[%s2567_s26 + $0x48] sm:$0xf] %vm1534_vm3, %v1851_v17  ;;  %v1852_v32 = vpack.c.bf16 %v1427_v26, %v1427_v26  ;;  %v1089_v24 = vadd.f32 %v1064_v18, %v2551_v33  ;;  %v1065_v20 = vmax.f32 %v1025_v23, 0.0  ;;  %v2097_v25 = vpop.f32.mrb[95].mxu0  ;;  %v2157_v27 = vpop.f32.mrb[95].mxu1  ;;  %v1379_v31 = vmax.f32 %v1339_v21, 0.0 }
 0x1a6   : > { %1554 = vst.msk [vmem:[%s2567_s26 + $0x4c] sm:$0xf] %vm1534_vm3, %v1852_v32  ;;  %v1403_v28 = vadd.f32 %v1378_v19, %v1089_v24  ;;  %v1090_v29 = vadd.f32 %v1065_v20, %v2553_v39 }
 0x1a8   : > { %v1428_v58 = vmul.f32 0.25, %v1403_v28  ;;  %v1404_v34 = vadd.f32 %v1379_v31, %v1090_v29 }
 0x1a9   : > { %v1030_v36 = vpop.f32.mrb[96].mxu0  ;;  %v1344_v37 = vpop.f32.mrb[96].mxu1 }
 0x1aa   : > { %v1853_v38 = vpack.c.bf16 %v1428_v58, %v1428_v58  ;;  %v1429_v40 = vmul.f32 0.25, %v1404_v34  ;;  %v1066_v63 = vmax.f32 %v1030_v36, 0.0  ;;  %v1380_v42 = vmax.f32 %v1344_v37, 0.0  ;;  %v2100_v33 = vpop.f32.mrb[97].mxu0  ;;  %v2160_v3 = vpop.f32.mrb[97].mxu1 }
 0x1ab   : > { %v1033_v41 = vpop.f32.mrb[98].mxu0  ;;  %v1347_v30 = vpop.f32.mrb[98].mxu1 }
 0x1ac   : > { %1555 = vst.msk [vmem:[%s2567_s26 + $0x50] sm:$0xf] %vm1534_vm3, %v1853_v38  ;;  %v1854_v43 = vpack.c.bf16 %v1429_v40, %v1429_v40  ;;  %v1091_v45 = vadd.f32 %v1066_v63, %v2555_v52  ;;  %v1067_v39 = vmax.f32 %v1033_v41, 0.0  ;;  %v2101_v48 = vpop.f32.mrb[99].mxu0  ;;  %v2161_v46 = vpop.f32.mrb[99].mxu1  ;;  %v1381_v35 = vmax.f32 %v1347_v30, 0.0 }
 0x1ae   : > { %1556 = vst.msk [vmem:[%s2567_s26 + $0x54] sm:$0xf] %vm1534_vm3, %v1854_v43  ;;  %v1405_v47 = vadd.f32 %v1380_v42, %v1091_v45  ;;  %v1092_v50 = vadd.f32 %v1067_v39, %v2557_v57 }
 0x1b0   : > { %v1430_v7 = vmul.f32 0.25, %v1405_v47  ;;  %v1406_v51 = vadd.f32 %v1381_v35, %v1092_v50 }
 0x1b1   : > { %v1038_v53 = vpop.f32.mrb[100].mxu0  ;;  %v1352_v54 = vpop.f32.mrb[100].mxu1 }
 0x1b2   : > { %v1855_v10 = vpack.c.bf16 %v1430_v7, %v1430_v7  ;;  %v1431_v55 = vmul.f32 0.25, %v1406_v51  ;;  %v1068_v56 = vmax.f32 %v1038_v53, 0.0  ;;  %v1382_v52 = vmax.f32 %v1352_v54, 0.0  ;;  %v2104_v60 = vpop.f32.mrb[101].mxu0  ;;  %v2164_v61 = vpop.f32.mrb[101].mxu1 }
 0x1b3   : > { %v1041_v59 = vpop.f32.mrb[102].mxu0  ;;  %v1355_v62 = vpop.f32.mrb[102].mxu1 }
 0x1b4   : > { %1557 = vst.msk [vmem:[%s2567_s26 + $0x58] sm:$0xf] %vm1534_vm3, %v1855_v10  ;;  %v1856_v15 = vpack.c.bf16 %v1431_v55, %v1431_v55  ;;  %v1093_v57 = vadd.f32 %v1068_v56, %v2559_v8  ;;  %v2105_v0 = vpop.f32.mrb[103].mxu0  ;;  %v2165_v4 = vpop.f32.mrb[103].mxu1 }
 0x1b6   : > { %1558 = vst.msk [vmem:[%s2567_s26 + $0x5c] sm:$0xf] %vm1534_vm3, %v1856_v15  ;;  %v1407_v5 = vadd.f32 %v1382_v52, %v1093_v57 }
 0x1b8   : > { %v1432_v2 = vmul.f32 0.25, %v1407_v5 }
 0x1ba   : > { %v1857_v6 = vpack.c.bf16 %v1432_v2, %v1432_v2 }
 0x1bc   : > { %1560 = vst.msk [vmem:[%s2567_s26 + $0x60] sm:$0x3] %vm1559_vm4, %v1857_v6 }
 0x1bd PF: > { %s12_s9 = sadd.s32 1, %s2240_s9  }
 0x1be   : > { %p9_p4 = scmp.ge.s32.totalorder %s12_s9, 4  }
 0x1c0   :  { %11 = sbr.rel (!%p9_p4) target bundleno = 1 (0x1), region = 61 }

// kernel: cnn_lenet_q_forward.6
= control target key start
LH: loop header
LB: loop body
LE: loop exit
PB: predicated region body
PF: predicated region fallthrough
CT: control target
= control target key end

     0   :  { %s784_s9 = smov 0   ;;  %s959_s0 = inlined_call_operand.vmem [shape: bf16[2,4,25,150], index: 0, kind: input, shape index: {}]   ;;  %s960_s1 = inlined_call_operand.vmem [shape: bf16[150,16], index: 1, kind: input, shape index: {}]   ;;  %s961_s2 = inlined_call_operand.vmem [shape: bf16[2,25,16], index: 2, kind: output, shape index: {}]  }
   0x1 LB: > { %s650_s10 = sadd.s32 4294967295, %s766_s9   ;;  %p654_p0 = scmp.ge.s32.totalorder %s766_s9, 1  ;;  %s766_s9 = sphi %s784_s9, %s12_s9  }
   0x2   : > { %p112_p1 = scmp.lt.s32.totalorder %s766_s9, 3 }
   0x4   : > { %p113_p2 = pnand %p654_p0, %p112_p1 }
   0x5   : > { %v795_v0 = vld [vmem:[%s960_s1] sm:$0xff] (!%p113_p2)   ;;  %v768_v1 = vmov (!%p113_p2), 0   ;;  %v804_v2 = vld [vmem:[%s960_s1 + $0x8] sm:$0xff] (!%p113_p2)   ;;  %p134_p3 = scmp.lt.s32.totalorder (!%p113_p2), %s650_s10, 1  ;;  %v815_v3 = vld [vmem:[%s960_s1 + $0x10] sm:$0xff] (!%p113_p2)   ;;  %vm243_vm0 = vcmask (!%p113_p2), 179200  }
   0x6   : > { %116 = sbr.rel (%p113_p2) target bundleno = 320 (0x140), region = 28  ;;  %254 = vmatprep.subr.bf16.mxu0 (!%p113_p2), %v768_v1  ;;  %336 = vmatprep.subr.bf16.mxu1 (!%p113_p2), %v768_v1  ;;  %v830_v4 = vld [vmem:[%s960_s1 + $0x18] sm:$0xff] (!%p113_p2)   ;;  %v842_v7 = vld [vmem:[%s960_s1 + $0x20] sm:$0xff] (!%p113_p2)   ;;  %v852_v8 = vld [vmem:[%s960_s1 + $0x28] sm:$0xff] (!%p113_p2)   ;;  %vm250_vm1 = vcmask (!%p113_p2), 1042432   ;;  %vm585_vm2 = vcmask (!%p113_p2), 125952  }
   0x7   : > { %255 = vmatpush1.bf16.msra.mxu0 (!%p113_p2), %v795_v0  ;;  %337 = vmatpush1.bf16.msra.mxu1 (!%p113_p2), %v795_v0  ;;  %v861_v9 = vld [vmem:[%s960_s1 + $0x30] sm:$0xff] (!%p113_p2)   ;;  %v870_v10 = vld [vmem:[%s960_s1 + $0x38] sm:$0xff] (!%p113_p2)   ;;  %v734_v11 = vld [vmem:[%s960_s1 + $0x40] sm:$0xff] (!%p113_p2)   ;;  %vm589_vm3 = vcmask (!%p113_p2), 122880   ;;  %vm590_vm4 = vsmask.f32 (!%p113_p2), 256 }
   0x8   : > { %256 = vmatprep.subr.bf16.mxu0 (!%p113_p2), %v768_v1  ;;  %338 = vmatprep.subr.bf16.mxu1 (!%p113_p2), %v768_v1  ;;  %v735_v12 = vld [vmem:[%s960_s1 + $0x48] ss:$0 sps:$4 sm:$0x77] (!%p113_p2)   ;;  %vm591_vm5 = vmand (!%p113_p2), %vm589_vm3, %vm590_vm4 }
   0x9   : > { %v252_v13 = vsel (!%p113_p2), %vm250_vm1, %v735_v12, 0 }
   0xb   : > { %257 = vmatpush1.bf16.msra.mxu0 (!%p113_p2), %v804_v2  ;;  %339 = vmatpush1.bf16.msra.mxu1 (!%p113_p2), %v804_v2 }
   0xc   : > { %258 = vmatprep.subr.bf16.mxu0 (!%p113_p2), %v768_v1  ;;  %340 = vmatprep.subr.bf16.mxu1 (!%p113_p2), %v768_v1 }
   0xd   : > { %s963_s10 = smov (!%p134_p3, %s650_s10), 1 }
   0xe   : > { %s711_s17 = sshll.u32 %s963_s10, 7  ;;  %s712_s7 = sshll.u32 %s963_s10, 4 }
   0xf   : > { %s823_s20 = scalar_lea.vmem %s959_s0, %s711_s17  ;;  %259 = vmatpush1.bf16.msra.mxu0 %v815_v3  ;;  %341 = vmatpush1.bf16.msra.mxu1 %v815_v3  ;;  %s946_s12 = scalar_lea.vmem %s961_s2, %s712_s7 }
  0x10   : > { %v738_v5 = vld [vmem:[%s823_s20 + $0x4] ss:$8 sps:$4 sm:$0xff]   ;;  %260 = vmatprep.subr.bf16.mxu0 %v768_v1  ;;  %342 = vmatprep.subr.bf16.mxu1 %v768_v1  ;;  %v736_v14 = vld [vmem:[%s823_s20] ss:$8 sps:$4 sm:$0xff]  }
  0x11   : > { %673 = vmatprep.mubr.msk.bf16.mxu0 %vm243_vm0, %v738_v5  ;;  %v741_v6 = vld [vmem:[%s823_s20 + $0x24] ss:$8 sps:$4 sm:$0xff]   ;;  %v739_v15 = vld [vmem:[%s823_s20 + $0x20] ss:$8 sps:$4 sm:$0xff]  }
  0x12   : > { %683 = vmatprep.mubr.msk.bf16.mxu1 %vm243_vm0, %v741_v6  ;;  %v742_v16 = vld [vmem:[%s823_s20 + $0x14] ss:$8 sps:$4 sm:$0x1f]   ;;  %v744_v18 = vld [vmem:[%s823_s20 + $0x10] ss:$8 sps:$4 sm:$0x1f]  }
  0x13   : > { %261 = vmatpush1.bf16.msra.mxu0 %v830_v4  ;;  %343 = vmatpush1.bf16.msra.mxu1 %v830_v4  ;;  %v745_v17 = vld [vmem:[%s823_s20 + $0x34] ss:$8 sps:$4 sm:$0x1f]   ;;  %v747_v19 = vld [vmem:[%s823_s20 + $0x30] ss:$8 sps:$4 sm:$0x1f]  }
  0x14   : > { %262 = vmatprep.subr.bf16.mxu0 %v768_v1  ;;  %344 = vmatprep.subr.bf16.mxu1 %v768_v1  ;;  %v750_v20 = vld [vmem:[%s823_s20 + $0x44] ss:$8 sps:$4 sm:$0xff]   ;;  %v748_v22 = vld [vmem:[%s823_s20 + $0x40] ss:$8 sps:$4 sm:$0xff]  }
  0x15   : > { %v753_v21 = vld [vmem:[%s823_s20 + $0x64] ss:$8 sps:$4 sm:$0xff]   ;;  %v751_v23 = vld [vmem:[%s823_s20 + $0x60] ss:$8 sps:$4 sm:$0xff]  }
  0x16   : > { %v754_v24 = vld [vmem:[%s823_s20 + $0x54] ss:$8 sps:$4 sm:$0x1f]   ;;  %v758_v26 = vld [vmem:[%s823_s20 + $0x50] ss:$8 sps:$4 sm:$0x1f]  }
  0x17   : > { %263 = vmatpush1.bf16.msra.mxu0 %v842_v7  ;;  %345 = vmatpush1.bf16.msra.mxu1 %v842_v7  ;;  %v756_v25 = vld [vmem:[%s823_s20 + $0x74] ss:$8 sps:$4 sm:$0x1f]   ;;  %v759_v27 = vld [vmem:[%s823_s20 + $0x70] ss:$8 sps:$4 sm:$0x1f]  }
  0x18   : > { %264 = vmatprep.subr.bf16.mxu0 %v768_v1  ;;  %346 = vmatprep.subr.bf16.mxu1 %v768_v1 }
  0x1b   : > { %265 = vmatpush1.bf16.msra.mxu0 %v852_v8  ;;  %347 = vmatpush1.bf16.msra.mxu1 %v852_v8 }
  0x1c   : > { %266 = vmatprep.subr.bf16.mxu0 %v768_v1  ;;  %348 = vmatprep.subr.bf16.mxu1 %v768_v1 }
  0x1f   : > { %267 = vmatpush1.bf16.msra.mxu0 %v861_v9  ;;  %349 = vmatpush1.bf16.msra.mxu1 %v861_v9 }
  0x20   : > { %268 = vmatprep.subr.bf16.mxu0 %v768_v1  ;;  %350 = vmatprep.subr.bf16.mxu1 %v768_v1 }
  0x23   : > { %269 = vmatpush1.bf16.msra.mxu0 %v870_v10  ;;  %351 = vmatpush1.bf16.msra.mxu1 %v870_v10 }
  0x24   : > { %270 = vmatprep.subr.bf16.mxu0 %v768_v1  ;;  %352 = vmatprep.subr.bf16.mxu1 %v768_v1 }
  0x27   : > { %271 = vmatpush1.bf16.msra.mxu0 %v734_v11  ;;  %353 = vmatpush1.bf16.msra.mxu1 %v734_v11 }
  0x28   : > { %272 = vmatprep.subr.bf16.mxu0 %v768_v1  ;;  %354 = vmatprep.subr.bf16.mxu1 %v768_v1 }
  0x2b   : > { %273 = vmatpush1.bf16.msra.mxu0 %v252_v13  ;;  %355 = vmatpush1.bf16.msra.mxu1 %v252_v13 }
  0x2c   : > { %422 = vmatprep.subr.bf16.mxu0 %v768_v1  ;;  %508 = vmatprep.subr.bf16.mxu1 %v768_v1 }
  0x2e   : > { %287 = vmatmul.mubr.bf16.vlgmr.msra.gmra.mrb[0].mxu0 %v736_v14  ;;  %369 = vmatmul.mubr.bf16.vlgmr.msra.gmra.mrb[0].mxu1 %v739_v15 }
  0x2f   : > { %423 = vmatpush1.bf16.msra.mxu0 %v795_v0  ;;  %509 = vmatpush1.bf16.msra.mxu1 %v795_v0 }
  0x30   : > { %424 = vmatprep.subr.bf16.mxu0 %v768_v1  ;;  %510 = vmatprep.subr.bf16.mxu1 %v768_v1 }
  0x31   : > { %674 = vmatprep.mubr.msk.bf16.mxu0 %vm243_vm0, %v742_v16  ;;  %684 = vmatprep.mubr.msk.bf16.mxu1 %vm243_vm0, %v745_v17 }
  0x33   : > { %425 = vmatpush1.bf16.msra.mxu0 %v804_v2  ;;  %511 = vmatpush1.bf16.msra.mxu1 %v804_v2 }
  0x34   : > { %426 = vmatprep.subr.bf16.mxu0 %v768_v1  ;;  %512 = vmatprep.subr.bf16.mxu1 %v768_v1 }
  0x36   : > { %295 = vmatmul.mubr.bf16.gmra.mrb[4].mxu0 %v744_v18  ;;  %377 = vmatmul.mubr.bf16.gmra.mrb[4].mxu1 %v747_v19 }
  0x37   : > { %427 = vmatpush1.bf16.msra.mxu0 %v815_v3  ;;  %513 = vmatpush1.bf16.msra.mxu1 %v815_v3 }
  0x38   : > { %428 = vmatprep.subr.bf16.mxu0 %v768_v1  ;;  %514 = vmatprep.subr.bf16.mxu1 %v768_v1 }
  0x39   : > { %693 = vmatprep.mubr.msk.bf16.mxu0 %vm243_vm0, %v750_v20  ;;  %703 = vmatprep.mubr.msk.bf16.mxu1 %vm243_vm0, %v753_v21 }
  0x3b   : > { %429 = vmatpush1.bf16.msra.mxu0 %v830_v4  ;;  %515 = vmatpush1.bf16.msra.mxu1 %v830_v4 }
  0x3c   : > { %430 = vmatprep.subr.bf16.mxu0 %v768_v1  ;;  %516 = vmatprep.subr.bf16.mxu1 %v768_v1 }
  0x3f   : > { %431 = vmatpush1.bf16.msra.mxu0 %v842_v7  ;;  %517 = vmatpush1.bf16.msra.mxu1 %v842_v7 }
  0x40   : > { %432 = vmatprep.subr.bf16.mxu0 %v768_v1  ;;  %518 = vmatprep.subr.bf16.mxu1 %v768_v1 }
  0x43   : > { %433 = vmatpush1.bf16.msra.mxu0 %v852_v8  ;;  %519 = vmatpush1.bf16.msra.mxu1 %v852_v8 }
  0x44   : > { %434 = vmatprep.subr.bf16.mxu0 %v768_v1  ;;  %520 = vmatprep.subr.bf16.mxu1 %v768_v1 }
  0x47   : > { %435 = vmatpush1.bf16.msra.mxu0 %v861_v9  ;;  %521 = vmatpush1.bf16.msra.mxu1 %v861_v9 }
  0x48   : > { %436 = vmatprep.subr.bf16.mxu0 %v768_v1  ;;  %522 = vmatprep.subr.bf16.mxu1 %v768_v1 }
  0x4b   : > { %437 = vmatpush1.bf16.msra.mxu0 %v870_v10  ;;  %523 = vmatpush1.bf16.msra.mxu1 %v870_v10 }
  0x4c   : > { %438 = vmatprep.subr.bf16.mxu0 %v768_v1  ;;  %524 = vmatprep.subr.bf16.mxu1 %v768_v1 }
  0x4f   : > { %439 = vmatpush1.bf16.msra.mxu0 %v734_v11  ;;  %525 = vmatpush1.bf16.msra.mxu1 %v734_v11 }
  0x50   : > { %440 = vmatprep.subr.bf16.mxu0 %v768_v1  ;;  %526 = vmatprep.subr.bf16.mxu1 %v768_v1 }
  0x53   : > { %441 = vmatpush1.bf16.msra.mxu0 %v252_v13  ;;  %527 = vmatpush1.bf16.msra.mxu1 %v252_v13 }
  0x56   : > { %455 = vmatmul.mubr.bf16.vlgmr.msra.gmra.mrb[8].mxu0 %v748_v22  ;;  %541 = vmatmul.mubr.bf16.vlgmr.msra.gmra.mrb[8].mxu1 %v751_v23 }
  0x57   : > { %694 = vmatprep.mubr.msk.bf16.mxu0 %vm243_vm0, %v754_v24  ;;  %704 = vmatprep.mubr.msk.bf16.mxu1 %vm243_vm0, %v756_v25 }
  0x5e   : > { %463 = vmatmul.mubr.bf16.gmra.mrb[12].mxu0 %v758_v26  ;;  %549 = vmatmul.mubr.bf16.gmra.mrb[12].mxu1 %v759_v27 }
 0x101   : > { %v288_v28 = vpop.f32.mrb[0].mxu0  ;;  %v370_v29 = vpop.f32.mrb[0].mxu1 }
 0x102   : > { %v303_v30 = vmax.f32 %v288_v28, 0.0  ;;  %v385_v31 = vmax.f32 %v370_v29, 0.0  ;;  %v290_v32 = vpop.f32.mrb[1].mxu0  ;;  %v372_v33 = vpop.f32.mrb[1].mxu1 }
 0x103   : > { %v291_v34 = vpop.f32.mrb[2].mxu0  ;;  %v373_v35 = vpop.f32.mrb[2].mxu1 }
 0x104   : > { %v389_v36 = vadd.f32 %v385_v31, %v303_v30  ;;  %v304_v37 = vmax.f32 %v291_v34, 0.0  ;;  %v386_v38 = vmax.f32 %v373_v35, 0.0  ;;  %v293_v39 = vpop.f32.mrb[3].mxu0  ;;  %v375_v40 = vpop.f32.mrb[3].mxu1  ;;  %v592_v31 = vld [vmem:[%s946_s12 + $0xc] sm:$0x1] }
 0x106   : > { %v390_v41 = vadd.f32 %v386_v38, %v304_v37 }
 0x109   : > { %v296_v42 = vpop.f32.mrb[4].mxu0  ;;  %v378_v43 = vpop.f32.mrb[4].mxu1 }
 0x10a   : > { %v305_v44 = vmax.f32 %v296_v42, 0.0  ;;  %v298_v45 = vpop.f32.mrb[5].mxu0  ;;  %v387_v46 = vmax.f32 %v378_v43, 0.0  ;;  %v380_v47 = vpop.f32.mrb[5].mxu1 }
 0x10b   : > { %v299_v48 = vpop.f32.mrb[6].mxu0  ;;  %v381_v49 = vpop.f32.mrb[6].mxu1 }
 0x10c   : > { %v391_v50 = vadd.f32 %v387_v46, %v305_v44  ;;  %v306_v51 = vmax.f32 %v299_v48, 0.0  ;;  %v301_v52 = vpop.f32.mrb[7].mxu0  ;;  %v388_v53 = vmax.f32 %v381_v49, 0.0  ;;  %v383_v54 = vpop.f32.mrb[7].mxu1 }
 0x10e   : > { %v392_v55 = vadd.f32 %v388_v53, %v306_v51 }
 0x129   : > { %v456_v56 = vpop.f32.mrb[8].mxu0  ;;  %v542_v57 = vpop.f32.mrb[8].mxu1 }
 0x12a   : > { %v471_v58 = vmax.f32 %v456_v56, 0.0  ;;  %v557_v59 = vmax.f32 %v542_v57, 0.0  ;;  %v458_v60 = vpop.f32.mrb[9].mxu0  ;;  %v544_v61 = vpop.f32.mrb[9].mxu1 }
 0x12b   : > { %v459_v62 = vpop.f32.mrb[10].mxu0  ;;  %v545_v63 = vpop.f32.mrb[10].mxu1 }
 0x12c   : > { %v475_v0 = vadd.f32 %v471_v58, %v389_v36  ;;  %v472_v1 = vmax.f32 %v459_v62, 0.0  ;;  %v461_v2 = vpop.f32.mrb[11].mxu0  ;;  %v547_v3 = vpop.f32.mrb[11].mxu1  ;;  %v558_v6 = vmax.f32 %v545_v63, 0.0 }
 0x12e   : > { %v561_v4 = vadd.f32 %v557_v59, %v475_v0  ;;  %v476_v5 = vadd.f32 %v472_v1, %v390_v41 }
 0x130   : > { %v565_v7 = vmul.f32 0.25, %v561_v4  ;;  %v562_v8 = vadd.f32 %v558_v6, %v476_v5 }
 0x131   : > { %v464_v9 = vpop.f32.mrb[12].mxu0  ;;  %v550_v10 = vpop.f32.mrb[12].mxu1 }
 0x132   : > { %v713_v11 = vpack.c.bf16 %v565_v7, %v565_v7  ;;  %v566_v12 = vmul.f32 0.25, %v562_v8  ;;  %v473_v13 = vmax.f32 %v464_v9, 0.0  ;;  %v559_v14 = vmax.f32 %v550_v10, 0.0  ;;  %v466_v15 = vpop.f32.mrb[13].mxu0  ;;  %v552_v16 = vpop.f32.mrb[13].mxu1 }
 0x133   : > { %v467_v17 = vpop.f32.mrb[14].mxu0  ;;  %v553_v18 = vpop.f32.mrb[14].mxu1 }
 0x134   : > { %586 = vst.msk [vmem:[%s946_s12] sm:$0xf] %vm585_vm2, %v713_v11  ;;  %v714_v19 = vpack.c.bf16 %v566_v12, %v566_v12  ;;  %v477_v20 = vadd.f32 %v473_v13, %v391_v50  ;;  %v474_v21 = vmax.f32 %v467_v17, 0.0  ;;  %v469_v22 = vpop.f32.mrb[15].mxu0  ;;  %v555_v23 = vpop.f32.mrb[15].mxu1  ;;  %v560_v26 = vmax.f32 %v553_v18, 0.0 }
 0x136   : > { %587 = vst.msk [vmem:[%s946_s12 + $0x4] sm:$0xf] %vm585_vm2, %v714_v19  ;;  %v563_v24 = vadd.f32 %v559_v14, %v477_v20  ;;  %v478_v25 = vadd.f32 %v474_v21, %v392_v55 }
 0x138   : > { %v567_v27 = vmul.f32 0.25, %v563_v24  ;;  %v564_v28 = vadd.f32 %v560_v26, %v478_v25 }
 0x13a   : > { %v715_v29 = vpack.c.bf16 %v567_v27, %v567_v27  ;;  %v568_v30 = vmul.f32 0.25, %v564_v28 }
 0x13c   : > { %588 = vst.msk [vmem:[%s946_s12 + $0x8] sm:$0xf] %vm585_vm2, %v715_v29  ;;  %v716_v32 = vpack.c.bf16 %v568_v30, %v568_v30 }
 0x13e   : > { %v593_v33 = vsel %vm591_vm5, %v716_v32, %v592_v31 }
 0x13f   : > { %594 = vst [vmem:[%s946_s12 + $0xc] sm:$0x1] %v593_v33 }
 0x140 PF: > { %s12_s9 = sadd.s32 1, %s766_s9  }
 0x141   : > { %p9_p4 = scmp.ge.s32.totalorder %s12_s9, 4  }
 0x143   :  { %11 = sbr.rel (!%p9_p4) target bundleno = 1 (0x1), region = 61 }

// kernel: cnn_lenet_q_forward.7
= control target key start
LH: loop header
LB: loop body
LE: loop exit
PB: predicated region body
PF: predicated region fallthrough
CT: control target
= control target key end

     0   :  { %s1042_s23 = smov 0   ;;  %s1196_s0 = inlined_call_operand.vmem [shape: bf16[2,1,400], index: 0, kind: input, shape index: {}]   ;;  %s1197_s1 = inlined_call_operand.vmem [shape: bf16[400,120], index: 1, kind: input, shape index: {}]   ;;  %s1198_s2 = inlined_call_operand.vmem [shape: bf16[120,84], index: 2, kind: input, shape index: {}]   ;;  %s1199_s3 = inlined_call_operand.vmem [shape: f32[1,84], index: 3, kind: input, shape index: {}]   ;;  %s1200_s4 = inlined_call_operand.vmem [shape: bf16[84,1], index: 4, kind: input, shape index: {}]   ;;  %s1201_s5 = inlined_call_operand.<no memory space> [shape: f32[1,1], index: 5, kind: input, shape index: {}]   ;;  %s1202_s6 = inlined_call_operand.vmem [shape: f32[2,1,1], index: 6, kind: output, shape index: {}]  }
   0x1   :  { %v11_v0 = vstv %s1201_s5 }
   0x2   :  { %12 = vst [vmem:[#allocation2] sm:$0x1] %v11_v0 }
   0x3 LB: > { %s816_s24 = sadd.s32 4294967295, %s998_s23   ;;  %p820_p0 = scmp.ge.s32.totalorder %s998_s23, 1  ;;  %s998_s23 = sphi %s1042_s23, %s18_s23  }
   0x4   : > { %p213_p1 = scmp.lt.s32.totalorder %s998_s23, 3 }
   0x6   : > { %p214_p2 = pnand %p820_p0, %p213_p1 }
   0x7   : > { %v953_v1 = vld [vmem:[%s1197_s1 + $0x40] sm:$0xff] (!%p214_p2)   ;;  %v1000_v2 = vmov (!%p214_p2), 0   ;;  %v956_v5 = vld [vmem:[%s1197_s1 + $0x48] sm:$0xff] (!%p214_p2)   ;;  %v959_v8 = vld [vmem:[%s1197_s1 + $0x50] sm:$0xff] (!%p214_p2)   ;;  %p240_p3 = scmp.lt.s32.totalorder (!%p214_p2), %s816_s24, 1  ;;  %v339_v21 = vlaneseq (!%p214_p2)  ;;  %vm505_vm0 = vcmask (!%p214_p2), 130048  }
   0x8   : > { %217 = sbr.rel (%p214_p2) target bundleno = 695 (0x2b7), region = 44  ;;  %549 = vmatprep.subr.bf16.mxu1 (!%p214_p2), %v1000_v2  ;;  %v954_v3 = vld [vmem:[%s1197_s1 + $0x80] sm:$0xff] (!%p214_p2)   ;;  %867 = vmatprep.subr.bf16.mxu0 (!%p214_p2), %v953_v1  ;;  %v957_v6 = vld [vmem:[%s1197_s1 + $0x88] sm:$0xff] (!%p214_p2)   ;;  %v960_v9 = vld [vmem:[%s1197_s1 + $0x90] sm:$0xff] (!%p214_p2)   ;;  %v1001_v26 = vmov (!%p214_p2), 1966171168  }
   0x9   : > { %v955_v4 = vld [vmem:[%s1197_s1] sm:$0xff] (!%p214_p2)   ;;  %550 = vmatpush1.bf16.msra.mxu1 (!%p214_p2), %v954_v3  ;;  %v958_v7 = vld [vmem:[%s1197_s1 + $0x8] sm:$0xff] (!%p214_p2)   ;;  %v961_v10 = vld [vmem:[%s1197_s1 + $0x10] sm:$0xff] (!%p214_p2)   ;;  %v337_v27 = vunpack.c.l.s4 (!%p214_p2), %v1001_v26  ;;  %v340_v28 = vshrl.u32 (!%p214_p2), %v339_v21, 7  ;;  %v1002_v39 = vmov (!%p214_p2), 0.0   ;;  %vm640_vm1 = vcmask (!%p214_p2), 1043456  }
   0xa   : > { %868 = vmatpush3.bf16.msra.mxu0 (!%p214_p2), %v955_v4  ;;  %551 = vmatprep.subr.bf16.mxu1 (!%p214_p2), %v1000_v2  ;;  %v962_v11 = vld [vmem:[%s1197_s1 + $0x58] sm:$0xff] (!%p214_p2)   ;;  %v965_v14 = vld [vmem:[%s1197_s1 + $0x60] sm:$0xff] (!%p214_p2)   ;;  %v968_v17 = vld [vmem:[%s1197_s1 + $0x68] sm:$0xff] (!%p214_p2)   ;;  %vm1003_vm2 = vmmov (!%p214_p2), 0   ;;  %vm636_vm3 = vcmask (!%p214_p2), 982016   ;;  %vm723_vm4 = vcmask (!%p214_p2), 1041408  }
   0xb   : > { %869 = vmatprep.subr.bf16.mxu0 (!%p214_p2), %v956_v5  ;;  %v963_v12 = vld [vmem:[%s1197_s1 + $0x98] sm:$0xff] (!%p214_p2)   ;;  %v966_v15 = vld [vmem:[%s1197_s1 + $0xa0] sm:$0xff] (!%p214_p2)   ;;  %v969_v18 = vld [vmem:[%s1197_s1 + $0xa8] sm:$0xff] (!%p214_p2)   ;;  %v338_v31 = vunpack.c.0.s8 (!%p214_p2), %v337_v27  ;;  %vm719_vm5 = vcmask (!%p214_p2), 687104   ;;  %vm767_vm6 = vcmask (!%p214_p2), 0  }
   0xc   : > { %v964_v13 = vld [vmem:[%s1197_s1 + $0x18] sm:$0xff] (!%p214_p2)   ;;  %v967_v16 = vld [vmem:[%s1197_s1 + $0x20] sm:$0xff] (!%p214_p2)   ;;  %v970_v19 = vld [vmem:[%s1197_s1 + $0x28] sm:$0xff] (!%p214_p2)  }
   0xd   : > { %552 = vmatpush1.bf16.msra.mxu1 (!%p214_p2), %v957_v6  ;;  %v971_v20 = vld [vmem:[%s1197_s1 + $0x70] sm:$0xff] (!%p214_p2)   ;;  %v974_v25 = vld [vmem:[%s1197_s1 + $0x78] sm:$0xff] (!%p214_p2)   ;;  %v341_v33 = vsub.s32 (!%p214_p2), %v338_v31, %v340_v28  ;;  %v977_v34 = vld [vmem:[%s1197_s1 + $0xc0] sm:$0xff] (!%p214_p2)  }
   0xe   : > { %870 = vmatpush3.bf16.msra.mxu0 (!%p214_p2), %v958_v7  ;;  %553 = vmatprep.subr.bf16.mxu1 (!%p214_p2), %v1000_v2  ;;  %v972_v22 = vld [vmem:[%s1197_s1 + $0xb0] sm:$0xff] (!%p214_p2)   ;;  %v975_v29 = vld [vmem:[%s1197_s1 + $0xb8] sm:$0xff] (!%p214_p2)   ;;  %v978_v37 = vld [vmem:[%s1198_s2] sm:$0xff] (!%p214_p2)  }
   0xf   : > { %871 = vmatprep.subr.bf16.mxu0 %v959_v8  ;;  %s1204_s24 = smov (!%p240_p3, %s816_s24), 1  ;;  %v973_v23 = vld [vmem:[%s1197_s1 + $0x30] sm:$0xff]   ;;  %v976_v32 = vld [vmem:[%s1197_s1 + $0x38] sm:$0xff]   ;;  %v979_v41 = vld [vmem:[%s1198_s2 + $0x8] sm:$0xff]  }
  0x10   : > { %s821_s9 = sshll.u32 %s1204_s24, 2  ;;  %v980_v42 = vld [vmem:[%s1198_s2 + $0x10] sm:$0xff]   ;;  %v981_v43 = vld [vmem:[%s1198_s2 + $0x18] sm:$0xff]   ;;  %v982_v44 = vld [vmem:[%s1198_s2 + $0x20] sm:$0xff]   ;;  %s246_s17 = scalar_lea.vmem %s1202_s6, %s1204_s24 }
  0x11   : > { %554 = vmatpush1.bf16.msra.mxu1 %v960_v9  ;;  %s243_s18 = scalar_lea.vmem %s1196_s0, %s821_s9  ;;  %v983_v45 = vld [vmem:[%s1198_s2 + $0x28] sm:$0xff]   ;;  %v984_v46 = vld [vmem:[%s1198_s2 + $0x30] sm:$0xff]   ;;  %v985_v47 = vld [vmem:[%s1198_s2 + $0x38] ss:$0 sps:$4 sm:$0xff]  }
  0x12   : > { %872 = vmatpush3.bf16.msra.mxu0 %v961_v10  ;;  %555 = vmatprep.subr.bf16.mxu1 %v1000_v2  ;;  %v822_v24 = vld.sshfl [vmem:[%s243_s18] sm:$0x33 pattern:$0x75316420]  ;;  %v642_v48 = vsel %vm640_vm1, %v985_v47, 0  ;;  %v987_v50 = vld [vmem:[%s1200_s4 + $0x8] sm:$0xff]  }
  0x13   : > { %873 = vmatprep.subr.bf16.mxu0 %v962_v11  ;;  %v335_v30 = vcombine.high %v822_v24, %v822_v24  ;;  %v342_v36 = vrot.slane %v822_v24, %v341_v33  ;;  %v986_v49 = vld [vmem:[%s1200_s4] sm:$0xff]   ;;  %v988_v51 = vld [vmem:[%s1200_s4 + $0x10] sm:$0xff]   ;;  %v989_v52 = vld [vmem:[%s1200_s4 + $0x18] sm:$0xff]  }
  0x14   : > { %v990_v1 = vld [vmem:[%s1200_s4 + $0x20] sm:$0xff]  }
  0x15   : > { %556 = vmatpush1.bf16.msra.mxu1 %v963_v12  ;;  %v349_v35 = vrot.slane %v335_v30, %v341_v33  ;;  %v350_v40 = vcombine.high %v342_v36, %v342_v36  ;;  %v313_v4 = vld [vmem:[%s1199_s3] sm:$0x1] }
  0x16   : > { %874 = vmatpush3.bf16.msra.mxu0 %v964_v13  ;;  %557 = vmatprep.subr.bf16.mxu1 %v1000_v2  ;;  %v325_v12 = vld [vmem:[#allocation2] sm:$0x1] }
  0x17   : > { %875 = vmatprep.subr.bf16.mxu0 %v965_v14  ;;  %541 = vmatprep.mubr.bf16.mxu0 %v349_v35  ;;  %v351_v38 = vcombine.high %v349_v35, %v349_v35 }
  0x19   : > { %558 = vmatpush1.bf16.msra.mxu1 %v966_v15  ;;  %848 = vmatprep.mubr.msk.bf16.mxu1 %vm505_vm0, %v351_v38 }
  0x1a   : > { %876 = vmatpush3.bf16.msra.mxu0 %v967_v16  ;;  %559 = vmatprep.subr.bf16.mxu1 %v1000_v2 }
  0x1b   : > { %877 = vmatprep.subr.bf16.mxu0 %v968_v17 }
  0x1d   : > { %560 = vmatpush1.bf16.msra.mxu1 %v969_v18 }
  0x1e   : > { %878 = vmatpush3.bf16.msra.mxu0 %v970_v19  ;;  %561 = vmatprep.subr.bf16.mxu1 %v1000_v2 }
  0x1f   : > { %879 = vmatprep.subr.bf16.mxu0 %v971_v20 }
  0x21   : > { %562 = vmatpush1.bf16.msra.mxu1 %v972_v22 }
  0x22   : > { %880 = vmatpush3.bf16.msra.mxu0 %v973_v23  ;;  %563 = vmatprep.subr.bf16.mxu1 %v1000_v2 }
  0x23   : > { %881 = vmatprep.subr.bf16.mxu0 %v974_v25 }
  0x25   : > { %564 = vmatpush1.bf16.msra.mxu1 %v975_v29 }
  0x26   : > { %882 = vmatpush3.bf16.msra.mxu0 %v976_v32  ;;  %565 = vmatprep.subr.bf16.mxu1 %v1000_v2  ;;  %v991_v2 = vld [vmem:[%s1200_s4 + $0x28] ss:$0 sps:$4 sm:$0x33]  }
  0x27   : > { %905 = vmatprep.subr.bf16.mxu0 %v1002_v39  ;;  %v725_v3 = vsel %vm723_vm4, %v991_v2, 0 }
  0x29   : > { %542 = vmatmul.mubr.bf16.vlgmr.msra.gmra.mrb[0].mxu0 %v342_v36  ;;  %566 = vmatpush1.bf16.msra.mxu1 %v977_v34 }
  0x2a   : > { %906 = vmatpush3.bf16.msra.mxu0 %v978_v37  ;;  %925 = vmatprep.subr.bf16.mxu1 %v1002_v39 }
  0x2b   : > { %907 = vmatprep.subr.bf16.mxu0 %v1002_v39  ;;  %921 = vmatprep.mubr.msk.bf16.mxu0 %vm1003_vm2, %v1002_v39 }
  0x2c   : > { %582 = vmatmul.mubr.bf16.vlgmr.msra.gmra.mrb[0].mxu1 %v350_v40 }
  0x2d   : > { %937 = vmatprep.mubr.msk.bf16.mxu1 %vm1003_vm2, %v1002_v39  ;;  %926 = vmatpush3.bf16.msra.mxu1 %v986_v49 }
  0x2e   : > { %908 = vmatpush3.bf16.msra.mxu0 %v979_v41  ;;  %927 = vmatprep.subr.bf16.mxu1 %v1002_v39 }
  0x2f   : > { %909 = vmatprep.subr.bf16.mxu0 %v1002_v39 }
  0x31   : > { %928 = vmatpush3.bf16.msra.mxu1 %v987_v50 }
  0x32   : > { %910 = vmatpush3.bf16.msra.mxu0 %v980_v42  ;;  %929 = vmatprep.subr.bf16.mxu1 %v1002_v39 }
  0x33   : > { %911 = vmatprep.subr.bf16.mxu0 %v1002_v39 }
  0x35   : > { %930 = vmatpush3.bf16.msra.mxu1 %v988_v51 }
  0x36   : > { %912 = vmatpush3.bf16.msra.mxu0 %v981_v43  ;;  %931 = vmatprep.subr.bf16.mxu1 %v1002_v39 }
  0x37   : > { %913 = vmatprep.subr.bf16.mxu0 %v1002_v39 }
  0x39   : > { %932 = vmatpush3.bf16.msra.mxu1 %v989_v52 }
  0x3a   : > { %914 = vmatpush3.bf16.msra.mxu0 %v982_v44  ;;  %933 = vmatprep.subr.bf16.mxu1 %v1002_v39 }
  0x3b   : > { %915 = vmatprep.subr.bf16.mxu0 %v1002_v39 }
  0x3d   : > { %934 = vmatpush3.bf16.msra.mxu1 %v990_v1 }
  0x3e   : > { %916 = vmatpush3.bf16.msra.mxu0 %v983_v45  ;;  %935 = vmatprep.subr.bf16.mxu1 %v1002_v39 }
  0x3f   : > { %917 = vmatprep.subr.bf16.mxu0 %v1002_v39 }
  0x41   : > { %936 = vmatpush3.bf16.msra.mxu1 %v725_v3 }
  0x42   : > { %918 = vmatpush3.bf16.msra.mxu0 %v984_v46 }
  0x43   : > { %919 = vmatprep.subr.bf16.mxu0 %v1002_v39 }
  0x46   : > { %920 = vmatpush3.bf16.msra.mxu0 %v642_v48 }
  0xfc   : > { %v883_v53 = vpop.f32.mrb[0].mxu0 }
  0xfd   : > { %v884_v54 = vpop.f32.mrb[1].mxu0 }
  0xfe   : > { %v885_v55 = vadd.f32 %v884_v54, %v883_v53  ;;  %v886_v56 = vpop.f32.mrb[2].mxu0 }
  0xff   : > { %v887_v57 = vpop.f32.mrb[3].mxu0  ;;  %v583_v58 = vpop.f32.mrb[0].mxu1 }
 0x100   : > { %v584_v59 = vadd.f32 %v885_v55, %v583_v58  ;;  %v585_v60 = vpop.f32.mrb[1].mxu1 }
 0x101   : > { %v586_v61 = vpop.f32.mrb[2].mxu1 }
 0x102   : > { %v589_v62 = vmax.f32 %v584_v59, 0.0  ;;  %v587_v63 = vpop.f32.mrb[3].mxu1 }
 0x104   : > { %v590_v0 = vpack.c.bf16 %v589_v62, %v589_v62 }
 0x106   : > { %922 = vmatmul.mubr.msk.bf16.vlgmr.msra.gmra.mrb[4].mxu0 %vm636_vm3, %v590_v0 }
 0x1d9   : > { %v678_v5 = vpop.f32.mrb[4].mxu0 }
 0x1da   : > { %v679_v6 = vadd.f32 %v678_v5, %v313_v4  ;;  %v923_v7 = vpop.f32.mrb[5].mxu0 }
 0x1db   : > { %v681_v8 = vpop.f32.mrb[6].mxu0 }
 0x1dc   : > { %v684_v9 = vmax.f32 %v679_v6, 0.0  ;;  %v924_v10 = vpop.f32.mrb[7].mxu0 }
 0x1de   : > { %v685_v11 = vpack.c.bf16 %v684_v9, %v684_v9 }
 0x1e0   : > { %938 = vmatmul.mubr.msk.bf16.vlgmr.msra.gmra.mrb[4].mxu1 %vm719_vm5, %v685_v11 }
 0x2b3   : > { %v761_v13 = vpop.f32.mrb[4].mxu1 }
 0x2b4   : > { %v762_v14 = vadd.f32 %v761_v13, %v325_v12  ;;  %v939_v15 = vpop.f32.mrb[5].mxu1 }
 0x2b5   : > { %v764_v16 = vpop.f32.mrb[6].mxu1 }
 0x2b6   : > { %768 = vst.msk [vmem:[%s246_s17] sm:$0x1] %vm767_vm6, %v762_v14  ;;  %v940_v17 = vpop.f32.mrb[7].mxu1 }
 0x2b7 PF: > { %s18_s23 = sadd.s32 1, %s998_s23  }
 0x2b8   : > { %p15_p4 = scmp.ge.s32.totalorder %s18_s23, 4  }
 0x2ba   :  { %17 = sbr.rel (!%p15_p4) target bundleno = 3 (0x3), region = 74 }

</bundles_post_ra>
